<compile_context>
chip_gen: v6e
topology: v6e:2x2x1
jax: 0.10.0
libtpu: 0.0.40
codegen_flags: <defaults>
</compile_context>

<pallas_src>
import math
import jax
import jax.numpy as jnp
from jax.experimental import pallas as pl
from jax.experimental.pallas import tpu as pltpu

# ----------------- synthetic config (module __init__ shapes) -----------------
N_EVENT_TYPES = 6
N_TOKENS = [16, 4, 16, 16, 16, 16]     # n_tokens[1] is forced to 4 in __init__
EMB_SIZES = [256] * 6                  # hard-coded in the module
EMB_TOTAL = sum(EMB_SIZES)             # 1536
D_MODEL = 128
D_FF = 256
N_LAYER = 2
LN_EPS = 1e-12

TOK_TOTAL = sum(N_TOKENS)              # 84
TOK_OFFSETS = [0]
for _n in N_TOKENS[:-1]:
    TOK_OFFSETS.append(TOK_OFFSETS[-1] + _n)
EMB_PAD = 128                          # folded-embedding rows padded (sublane/lane friendly)
PROJ_PAD = 128                         # concatenated proj heads padded -> lane-dense output


# ------------------------------- Pallas kernel --------------------------------
def fused_forward_kernel(ids_ref, allowed_ref, emb_ref, vecs_ref,
                         wqkv_ref, wo_ref, w1_ref, w2_ref, projw_ref, out_ref):
    """Whole forward for a block of BB batch elements; activations stay in VMEM."""
    bb, r, _ = ids_ref.shape           # r = S + G rows per batch element (h then g)
    s = allowed_ref.shape[2]           # content-stream length S
    g = r - s                          # query-stream length G
    d = emb_ref.shape[1]
    m = bb * r                         # stacked row count for all weight matmuls
    scale = 1.0 / math.sqrt(d)  # TODO(synk): single-head simplification (no per-head scale)

    def mm(a, b):
        return jnp.dot(a.astype(jnp.bfloat16), b.astype(jnp.bfloat16),
                       preferred_element_type=jnp.float32)

    def layernorm(y, gamma, beta):
        mu = jnp.mean(y, axis=-1, keepdims=True)
        var = jnp.mean((y - mu) ** 2, axis=-1, keepdims=True)
        return (y - mu) * jax.lax.rsqrt(var + LN_EPS) * gamma + beta

    # ---- packed small parameters (one slab, sliced here) ----
    in_b = vecs_ref[0:1, :d]                          # (1, D)
    proj_b = vecs_ref[1:2, :PROJ_PAD]                 # (1, 128)

    # ---- fused one-hot embedding for BOTH streams and all BB elements ----
    # ids already carry the per-type column offsets (folded in the wrapper).
    ids = ids_ref[...]                                                  # (BB, r, 6)
    iota = jax.lax.broadcasted_iota(jnp.int32, (bb, r, EMB_PAD), 2)
    oh = jnp.zeros((bb, r, EMB_PAD), jnp.bfloat16)
    for i in range(N_EVENT_TYPES):
        oh = oh + (iota == ids[:, :, i:i + 1]).astype(jnp.bfloat16)
    x = mm(oh.reshape(m, EMB_PAD), emb_ref[...]) + in_b                 # (M, D) f32

    allowed = allowed_ref[...]                                          # (BB, r, S) f32
    # TODO(synk): relative-position bias, bar_ids embeddings, multi-head split,
    # attention_mask and mems of the external modified XLNetModel are not
    # reproduced (class not in the provided source).
    for l in range(N_LAYER):
        row = 2 + 6 * l
        ln1_g = vecs_ref[row + 0:row + 1, :d]
        ln1_b = vecs_ref[row + 1:row + 2, :d]
        b1 = vecs_ref[row + 2:row + 3, :]             # (1, D_FF)
        b2 = vecs_ref[row + 3:row + 4, :d]
        ln2_g = vecs_ref[row + 4:row + 5, :d]
        ln2_b = vecs_ref[row + 5:row + 6, :d]

        # TODO(synk): split wqkv into wq / wkv (K,V only needed for the first S
        # content rows) if G ever grows much larger than S; fused wins at S=G.
        qkv = mm(x, wqkv_ref[l]).reshape(bb, r, 3 * d)                  # (BB, r, 3D) f32
        q = qkv[:, :, :d]                            # every row (h and g) is a query
        k = qkv[:, :s, d:2 * d]                      # keys/values from content rows only
        v = qkv[:, :s, 2 * d:3 * d]

        # fused two-stream attention: one score matmul / softmax / PV per layer
        scores = jnp.einsum('bqd,bkd->bqk', q.astype(jnp.bfloat16),
                            k.astype(jnp.bfloat16),
                            preferred_element_type=jnp.float32) * scale  # (BB, r, S)
        scores = jnp.where(allowed > 0.5, scores, -1e30)
        mx = jnp.max(scores, axis=-1, keepdims=True)
        e = jnp.exp(scores - mx) * allowed           # re-mask post-exp: all-masked rows -> 0
        denom = jnp.sum(e, axis=-1, keepdims=True)
        p = e * pl.reciprocal(denom + 1e-30, approx=True)
        ctx = jnp.einsum('bqk,bkd->bqd', p.astype(jnp.bfloat16),
                         v.astype(jnp.bfloat16),
                         preferred_element_type=jnp.float32)             # (BB, r, D)

        attn_out = mm(ctx.reshape(m, d), wo_ref[l])                      # (M, D)
        x = layernorm(x + attn_out, ln1_g, ln1_b)

        hdn = jax.nn.gelu(mm(x, w1_ref[l]) + b1)                         # (M, D_FF)
        y = x + mm(hdn, w2_ref[l]) + b2
        x = layernorm(y, ln2_g, ln2_b)

    # query-stream last_hidden_state -> all 6 heads via one lane-dense matmul
    g_last = x.reshape(bb, r, d)[:, s:, :].reshape(bb * g, d)            # (BB*G, D)
    out = mm(g_last, projw_ref[...]) + proj_b                            # (BB*G, 128)
    out_ref[...] = out.reshape(bb, g, PROJ_PAD)


# ------------------------------ Pallas wrapper --------------------------------
def xlnet_forward(fp, input_ids, attention_mask, perm_mask, target_mapping,
                  bar_ids=None, input_ids_g=None, block_b=None):
    """Mirror of XLNetForPredictingMiddleNotes.forward (simplified XLNet body)."""
    # TODO(synk): attention_mask is None in the reference predict path and is
    # not used; bar_ids positional information is not reproduced.
    b, s, _ = input_ids.shape
    gq = input_ids_g.shape[1]
    r = s + gq

    # Batch blocking: >=2 grid steps so both v7x TensorCores are used; rows of
    # all BB elements inside a block are stacked for fat MXU matmuls.
    # On v5e/v6e (1 TC) pass block_b=b to fold the whole batch into one step.
    if block_b is None:
        block_b = max(1, -(-b // 2))
    n_blocks = -(-b // block_b)
    b_pad = n_blocks * block_b

    # Fold per-type token offsets into the ids and concat both streams (XLA side).
    offs = jnp.asarray(TOK_OFFSETS, jnp.int32)
    ids = jnp.concatenate([input_ids.astype(jnp.int32),
                           input_ids_g.astype(jnp.int32)], axis=1) + offs     # (B, S+G, 6)

    # Layer-invariant masks, hoisted out of the kernel; h and g streams stacked
    # row-wise to match the kernel's (h;g) row layout. Thresholded comparisons.
    pm = perm_mask.astype(jnp.float32)
    tm = target_mapping.astype(jnp.float32)
    eye = jnp.eye(s, dtype=jnp.float32)[None]
    allowed_h = jnp.logical_or(pm < 0.5, eye > 0.5).astype(jnp.float32)        # (B,S,S)
    mapped = jnp.einsum("bgs,bst->bgt", tm, pm)
    allowed_g = (mapped < 0.5).astype(jnp.float32)                             # (B,G,S)
    allowed = jnp.concatenate([allowed_h, allowed_g], axis=1)                  # (B,S+G,S)
    # TODO(synk): for large S, switch to KV-tiled online softmax with int8/bf16
    # masks (O(S^2) f32 blocks are the first thing to break v7x's 64 MiB VMEM).

    if b_pad != b:
        ids = jnp.pad(ids, ((0, b_pad - b), (0, 0), (0, 0)))
        allowed = jnp.pad(allowed, ((0, b_pad - b), (0, 0), (0, 0)))

    def shared(shape):
        return pl.BlockSpec(shape, lambda i, _n=len(shape): (0,) * _n)

    def batched(shape):
        return pl.BlockSpec((block_b,) + shape,
                            lambda i, _n=len(shape): (i,) + (0,) * _n)

    out = pl.pallas_call(
        fused_forward_kernel,
        grid=(n_blocks,),
        in_specs=[batched((r, N_EVENT_TYPES)), batched((r, s)),
                  shared(fp["emb_tab"].shape), shared(fp["vecs"].shape),
                  shared(fp["wqkv"].shape), shared(fp["wo"].shape),
                  shared(fp["w1"].shape), shared(fp["w2"].shape),
                  shared(fp["proj_w"].shape)],
        out_specs=batched((gq, PROJ_PAD)),
        out_shape=jax.ShapeDtypeStruct((b_pad, gq, PROJ_PAD), jnp.float32),
        compiler_params=pltpu.CompilerParams(
            dimension_semantics=("parallel",),
            vmem_limit_bytes=32 * 1024 * 1024),
    )(ids, allowed, fp["emb_tab"], fp["vecs"], fp["wqkv"], fp["wo"],
      fp["w1"], fp["w2"], fp["proj_w"])

    out = out[:b]
    ys = []
    col = 0
    for i in range(N_EVENT_TYPES):
        ys.append(out[:, :, col:col + N_TOKENS[i]])
        col += N_TOKENS[i]
    return ys


# --------------------------------- parameters ---------------------------------
def init_params(key):
    """Parameters in the original module's layout (per-type emb, in_linear, heads)."""
    k = [key]

    def nxt():
        k[0], sub = jax.random.split(k[0])
        return sub

    def w(shape):
        return 0.02 * jax.random.normal(nxt(), shape, jnp.float32)

    params = {
        "word_emb": [w((N_TOKENS[i], EMB_SIZES[i])) for i in range(N_EVENT_TYPES)],
        "in_w": w((EMB_TOTAL, D_MODEL)),
        "in_b": jnp.zeros((1, D_MODEL), jnp.float32),
        "layers": [],
        "proj_w": [w((D_MODEL, N_TOKENS[i])) for i in range(N_EVENT_TYPES)],
        "proj_b": [jnp.zeros((1, N_TOKENS[i]), jnp.float32) for i in range(N_EVENT_TYPES)],
    }
    for _ in range(N_LAYER):
        params["layers"].append(dict(
            wq=w((D_MODEL, D_MODEL)), wk=w((D_MODEL, D_MODEL)),
            wv=w((D_MODEL, D_MODEL)), wo=w((D_MODEL, D_MODEL)),
            ln1_g=jnp.ones((1, D_MODEL), jnp.float32),
            ln1_b=jnp.zeros((1, D_MODEL), jnp.float32),
            ffn_w1=w((D_MODEL, D_FF)), ffn_b1=jnp.zeros((1, D_FF), jnp.float32),
            ffn_w2=w((D_FF, D_MODEL)), ffn_b2=jnp.zeros((1, D_MODEL), jnp.float32),
            ln2_g=jnp.ones((1, D_MODEL), jnp.float32),
            ln2_b=jnp.zeros((1, D_MODEL), jnp.float32),
        ))
    return params


def fuse_params(params):
    """One-time XLA-side precompute: fold embeddings into in_linear, stack layer
    weights, concat QKV and projection heads, pack all small vectors into one
    slab, cast MXU weights to bf16."""
    sqrt_d = math.sqrt(float(EMB_SIZES[0]))
    tabs, col = [], 0
    for i in range(N_EVENT_TYPES):
        slab = params["in_w"][col:col + EMB_SIZES[i], :]                  # (256, D)
        tabs.append((params["word_emb"][i] * sqrt_d) @ slab)              # (n_tok_i, D)
        col += EMB_SIZES[i]
    emb_tab = jnp.concatenate(tabs, axis=0)                               # (84, D)
    emb_tab = jnp.pad(emb_tab, ((0, EMB_PAD - TOK_TOTAL), (0, 0)))        # (128, D)

    def stack(key):
        return jnp.stack([lp[key] for lp in params["layers"]], axis=0)

    wqkv = jnp.stack([jnp.concatenate([lp["wq"], lp["wk"], lp["wv"]], axis=1)
                      for lp in params["layers"]], axis=0)                # (L, D, 3D)

    proj_w = jnp.concatenate(params["proj_w"], axis=1)                    # (D, 84)
    proj_b = jnp.concatenate([pb.reshape(1, -1) for pb in params["proj_b"]], axis=1)
    proj_w = jnp.pad(proj_w, ((0, 0), (0, PROJ_PAD - TOK_TOTAL)))         # (D, 128)
    proj_b = jnp.pad(proj_b, ((0, 0), (0, PROJ_PAD - TOK_TOTAL)))         # (1, 128)

    # Pack all small vectors into one (2 + 6L, D_FF) f32 slab (lane width 256):
    # row 0: in_b | row 1: proj_b | per layer: ln1_g, ln1_b, b1, b2, ln2_g, ln2_b
    def pad_row(v):
        v = v.reshape(1, -1)
        return jnp.pad(v, ((0, 0), (0, D_FF - v.shape[1])))

    rows = [pad_row(params["in_b"]), pad_row(proj_b)]
    for lp in params["layers"]:
        rows += [pad_row(lp["ln1_g"]), pad_row(lp["ln1_b"]), pad_row(lp["ffn_b1"]),
                 pad_row(lp["ffn_b2"]), pad_row(lp["ln2_g"]), pad_row(lp["ln2_b"])]
    vecs = jnp.concatenate(rows, axis=0)                                  # (2+6L, 256)

    bf = lambda x: x.astype(jnp.bfloat16)
    return dict(
        emb_tab=bf(emb_tab), vecs=vecs,
        wqkv=bf(wqkv), wo=bf(stack("wo")),
        w1=bf(stack("ffn_w1")), w2=bf(stack("ffn_w2")),
        proj_w=bf(proj_w),
    )


# ------------------------------------ main -------------------------------------
if __name__ == "__main__":
    key = jax.random.PRNGKey(0)
    pkey, dkey = jax.random.split(key)
    params = init_params(pkey)
    fp = fuse_params(params)

    B, S = 2, 8
    G = S
    dkeys = jax.random.split(dkey, 4)

    def make_ids(k):
        cols = [jax.random.randint(jax.random.fold_in(k, i), (B, S, 1), 0, N_TOKENS[i])
                for i in range(N_EVENT_TYPES)]
        return jnp.concatenate(cols, axis=-1).astype(jnp.int32)

    input_ids = make_ids(dkeys[0])       # [bsz, seq_len, n_event_type]
    input_ids_g = make_ids(dkeys[1])     # query-stream ids, same layout

    # perm_mask as built in predict(): the condition prefix is visible to all,
    # generated token i additionally sees generated tokens [cond, i).
    cond = S // 2
    perm_mask = jnp.ones((B, S, S), jnp.float32)
    perm_mask = perm_mask.at[:, :, :cond].set(0.0)
    row = jnp.arange(S)[:, None]
    colm = jnp.arange(S)[None, :]
    gen_vis = (colm >= cond) & (colm < row)
    perm_mask = jnp.where(gen_vis[None, :, :], 0.0, perm_mask)

    target_mapping = jnp.broadcast_to(jnp.eye(S, dtype=jnp.float32), (B, G, S))
    bar_ids = jnp.cumsum(jax.random.randint(dkeys[2], (B, S), 0, 2), axis=-1).astype(jnp.int32)
    attention_mask = None

    forward = jax.jit(xlnet_forward)
    ys = forward(fp, input_ids, attention_mask, perm_mask, target_mapping,
                 bar_ids, input_ids_g)
    ys = jax.block_until_ready(ys)

    assert len(ys) == N_EVENT_TYPES
    for i in range(N_EVENT_TYPES):
        assert ys[i].shape == (B, G, N_TOKENS[i])
        assert bool(jnp.all(jnp.isfinite(ys[i])))
    print("KERNEL_OK")
</pallas_src>

<mosaic_0001>
module attributes {stable_mosaic.version = 11 : i64} {
  func.func @fused_forward_kernel(%arg0: i32, %arg1: memref<1x16x6xi32, #tpu.memory_space<vmem>>, %arg2: memref<1x16x8xf32, #tpu.memory_space<vmem>>, %arg3: memref<128x128xbf16, #tpu.memory_space<vmem>>, %arg4: memref<14x256xf32, #tpu.memory_space<vmem>>, %arg5: memref<2x128x384xbf16, #tpu.memory_space<vmem>>, %arg6: memref<2x128x128xbf16, #tpu.memory_space<vmem>>, %arg7: memref<2x128x256xbf16, #tpu.memory_space<vmem>>, %arg8: memref<2x256x128xbf16, #tpu.memory_space<vmem>>, %arg9: memref<128x128xbf16, #tpu.memory_space<vmem>>, %arg10: memref<1x8x128xf32, #tpu.memory_space<vmem>>) attributes {dimension_semantics = [#tpu.dimension_semantics<parallel>], iteration_bounds = array<i64: 2>, scalar_prefetch = 0 : i64, scratch_operands = 0 : i64, tpu.core_type = #tpu.core_type<tc>, window_params = [{transform_indices = @transform_0, window_bounds = array<i64: 1, 16, 6>}, {transform_indices = @transform_1, window_bounds = array<i64: 1, 16, 8>}, {pipeline_mode = #tpu.pipeline_mode<synchronous>, transform_indices = @transform_2, window_bounds = array<i64: 128, 128>}, {pipeline_mode = #tpu.pipeline_mode<synchronous>, transform_indices = @transform_3, window_bounds = array<i64: 14, 256>}, {pipeline_mode = #tpu.pipeline_mode<synchronous>, transform_indices = @transform_4, window_bounds = array<i64: 2, 128, 384>}, {pipeline_mode = #tpu.pipeline_mode<synchronous>, transform_indices = @transform_5, window_bounds = array<i64: 2, 128, 128>}, {pipeline_mode = #tpu.pipeline_mode<synchronous>, transform_indices = @transform_6, window_bounds = array<i64: 2, 128, 256>}, {pipeline_mode = #tpu.pipeline_mode<synchronous>, transform_indices = @transform_7, window_bounds = array<i64: 2, 256, 128>}, {pipeline_mode = #tpu.pipeline_mode<synchronous>, transform_indices = @transform_8, window_bounds = array<i64: 128, 128>}, {transform_indices = @transform_9, window_bounds = array<i64: 1, 8, 128>}]} {
    %c0 = arith.constant 0 : index
    %c0_0 = arith.constant 0 : index
    %0 = vector.load %arg4[%c0, %c0_0] : memref<14x256xf32, #tpu.memory_space<vmem>>, vector<1x128xf32>
    %c1 = arith.constant 1 : index
    %c0_1 = arith.constant 0 : index
    %1 = vector.load %arg4[%c1, %c0_1] : memref<14x256xf32, #tpu.memory_space<vmem>>, vector<1x128xf32>
    %c0_2 = arith.constant 0 : index
    %c0_3 = arith.constant 0 : index
    %c0_4 = arith.constant 0 : index
    %2 = vector.load %arg1[%c0_2, %c0_3, %c0_4] : memref<1x16x6xi32, #tpu.memory_space<vmem>>, vector<1x16x6xi32>
    %3 = tpu.iota {dimensions = array<i32: 2>} : vector<1x16x128xi32>
    %cst = arith.constant 0.000000e+00 : bf16
    %4 = vector.broadcast %cst : bf16 to vector<1x16x128xbf16>
    %5 = vector.extract_strided_slice %2 {offsets = [0, 0, 0], sizes = [1, 16, 1], strides = [1, 1, 1]} : vector<1x16x6xi32> to vector<1x16x1xi32>
    %6 = vector.broadcast %5 : vector<1x16x1xi32> to vector<1x16x128xi32>
    %7 = arith.cmpi eq, %3, %6 : vector<1x16x128xi32>
    %8 = arith.extui %7 : vector<1x16x128xi1> to vector<1x16x128xi32>
    %9 = arith.sitofp %8 : vector<1x16x128xi32> to vector<1x16x128xf32>
    %10 = arith.truncf %9 : vector<1x16x128xf32> to vector<1x16x128xbf16>
    %11 = arith.addf %4, %10 : vector<1x16x128xbf16>
    %12 = vector.extract_strided_slice %2 {offsets = [0, 0, 1], sizes = [1, 16, 1], strides = [1, 1, 1]} : vector<1x16x6xi32> to vector<1x16x1xi32>
    %13 = vector.broadcast %12 : vector<1x16x1xi32> to vector<1x16x128xi32>
    %14 = arith.cmpi eq, %3, %13 : vector<1x16x128xi32>
    %15 = arith.extui %14 : vector<1x16x128xi1> to vector<1x16x128xi32>
    %16 = arith.sitofp %15 : vector<1x16x128xi32> to vector<1x16x128xf32>
    %17 = arith.truncf %16 : vector<1x16x128xf32> to vector<1x16x128xbf16>
    %18 = arith.addf %11, %17 : vector<1x16x128xbf16>
    %19 = vector.extract_strided_slice %2 {offsets = [0, 0, 2], sizes = [1, 16, 1], strides = [1, 1, 1]} : vector<1x16x6xi32> to vector<1x16x1xi32>
    %20 = vector.broadcast %19 : vector<1x16x1xi32> to vector<1x16x128xi32>
    %21 = arith.cmpi eq, %3, %20 : vector<1x16x128xi32>
    %22 = arith.extui %21 : vector<1x16x128xi1> to vector<1x16x128xi32>
    %23 = arith.sitofp %22 : vector<1x16x128xi32> to vector<1x16x128xf32>
    %24 = arith.truncf %23 : vector<1x16x128xf32> to vector<1x16x128xbf16>
    %25 = arith.addf %18, %24 : vector<1x16x128xbf16>
    %26 = vector.extract_strided_slice %2 {offsets = [0, 0, 3], sizes = [1, 16, 1], strides = [1, 1, 1]} : vector<1x16x6xi32> to vector<1x16x1xi32>
    %27 = vector.broadcast %26 : vector<1x16x1xi32> to vector<1x16x128xi32>
    %28 = arith.cmpi eq, %3, %27 : vector<1x16x128xi32>
    %29 = arith.extui %28 : vector<1x16x128xi1> to vector<1x16x128xi32>
    %30 = arith.sitofp %29 : vector<1x16x128xi32> to vector<1x16x128xf32>
    %31 = arith.truncf %30 : vector<1x16x128xf32> to vector<1x16x128xbf16>
    %32 = arith.addf %25, %31 : vector<1x16x128xbf16>
    %33 = vector.extract_strided_slice %2 {offsets = [0, 0, 4], sizes = [1, 16, 1], strides = [1, 1, 1]} : vector<1x16x6xi32> to vector<1x16x1xi32>
    %34 = vector.broadcast %33 : vector<1x16x1xi32> to vector<1x16x128xi32>
    %35 = arith.cmpi eq, %3, %34 : vector<1x16x128xi32>
    %36 = arith.extui %35 : vector<1x16x128xi1> to vector<1x16x128xi32>
    %37 = arith.sitofp %36 : vector<1x16x128xi32> to vector<1x16x128xf32>
    %38 = arith.truncf %37 : vector<1x16x128xf32> to vector<1x16x128xbf16>
    %39 = arith.addf %32, %38 : vector<1x16x128xbf16>
    %40 = vector.extract_strided_slice %2 {offsets = [0, 0, 5], sizes = [1, 16, 1], strides = [1, 1, 1]} : vector<1x16x6xi32> to vector<1x16x1xi32>
    %41 = vector.broadcast %40 : vector<1x16x1xi32> to vector<1x16x128xi32>
    %42 = arith.cmpi eq, %3, %41 : vector<1x16x128xi32>
    %43 = arith.extui %42 : vector<1x16x128xi1> to vector<1x16x128xi32>
    %44 = arith.sitofp %43 : vector<1x16x128xi32> to vector<1x16x128xf32>
    %45 = arith.truncf %44 : vector<1x16x128xf32> to vector<1x16x128xbf16>
    %46 = arith.addf %39, %45 : vector<1x16x128xbf16>
    %47 = vector.shape_cast %46 : vector<1x16x128xbf16> to vector<16x128xbf16>
    %c0_5 = arith.constant 0 : index
    %c0_6 = arith.constant 0 : index
    %48 = vector.load %arg3[%c0_5, %c0_6] : memref<128x128xbf16, #tpu.memory_space<vmem>>, vector<128x128xbf16>
    %cst_7 = arith.constant dense<0.000000e+00> : vector<16x128xf32>
    %49 = tpu.matmul %47, %48, %cst_7 {dimension_numbers = #tpu.dot_dimension_numbers<[1], [0], [0], [1], [0, 0, 1, 1], [], []>} : vector<16x128xbf16>, vector<128x128xbf16>, vector<16x128xf32> -> vector<16x128xf32>
    %50 = vector.broadcast %0 : vector<1x128xf32> to vector<16x128xf32>
    %51 = arith.addf %49, %50 : vector<16x128xf32>
    %c0_8 = arith.constant 0 : index
    %c0_9 = arith.constant 0 : index
    %c0_10 = arith.constant 0 : index
    %52 = vector.load %arg2[%c0_8, %c0_9, %c0_10] : memref<1x16x8xf32, #tpu.memory_space<vmem>>, vector<1x16x8xf32>
    %c2 = arith.constant 2 : index
    %c0_11 = arith.constant 0 : index
    %53 = vector.load %arg4[%c2, %c0_11] : memref<14x256xf32, #tpu.memory_space<vmem>>, vector<1x128xf32>
    %c3 = arith.constant 3 : index
    %c0_12 = arith.constant 0 : index
    %54 = vector.load %arg4[%c3, %c0_12] : memref<14x256xf32, #tpu.memory_space<vmem>>, vector<1x128xf32>
    %c4 = arith.constant 4 : index
    %c0_13 = arith.constant 0 : index
    %55 = vector.load %arg4[%c4, %c0_13] : memref<14x256xf32, #tpu.memory_space<vmem>>, vector<1x256xf32>
    %c5 = arith.constant 5 : index
    %c0_14 = arith.constant 0 : index
    %56 = vector.load %arg4[%c5, %c0_14] : memref<14x256xf32, #tpu.memory_space<vmem>>, vector<1x128xf32>
    %c6 = arith.constant 6 : index
    %c0_15 = arith.constant 0 : index
    %57 = vector.load %arg4[%c6, %c0_15] : memref<14x256xf32, #tpu.memory_space<vmem>>, vector<1x128xf32>
    %c7 = arith.constant 7 : index
    %c0_16 = arith.constant 0 : index
    %58 = vector.load %arg4[%c7, %c0_16] : memref<14x256xf32, #tpu.memory_space<vmem>>, vector<1x128xf32>
    %c0_17 = arith.constant 0 : index
    %c0_18 = arith.constant 0 : index
    %c0_19 = arith.constant 0 : index
    %59 = vector.load %arg5[%c0_17, %c0_18, %c0_19] : memref<2x128x384xbf16, #tpu.memory_space<vmem>>, vector<1x128x384xbf16>
    %60 = vector.shape_cast %59 : vector<1x128x384xbf16> to vector<128x384xbf16>
    %61 = arith.truncf %51 : vector<16x128xf32> to vector<16x128xbf16>
    %cst_20 = arith.constant dense<0.000000e+00> : vector<16x384xf32>
    %62 = tpu.matmul %61, %60, %cst_20 {dimension_numbers = #tpu.dot_dimension_numbers<[1], [0], [0], [1], [0, 0, 1, 1], [], []>} : vector<16x128xbf16>, vector<128x384xbf16>, vector<16x384xf32> -> vector<16x384xf32>
    %63 = vector.shape_cast %62 : vector<16x384xf32> to vector<1x16x384xf32>
    %64 = vector.extract_strided_slice %63 {offsets = [0, 0, 0], sizes = [1, 16, 128], strides = [1, 1, 1]} : vector<1x16x384xf32> to vector<1x16x128xf32>
    %65 = vector.extract_strided_slice %63 {offsets = [0, 0, 128], sizes = [1, 8, 128], strides = [1, 1, 1]} : vector<1x16x384xf32> to vector<1x8x128xf32>
    %66 = vector.extract_strided_slice %63 {offsets = [0, 0, 256], sizes = [1, 8, 128], strides = [1, 1, 1]} : vector<1x16x384xf32> to vector<1x8x128xf32>
    %67 = arith.truncf %64 : vector<1x16x128xf32> to vector<1x16x128xbf16>
    %68 = arith.truncf %65 : vector<1x8x128xf32> to vector<1x8x128xbf16>
    "tpu.trace_start"() <{level = 10 : i32, message = "bqd,bkd->bqk"}> : () -> ()
    %cst_21 = arith.constant dense<0.000000e+00> : vector<1x16x8xf32>
    %69 = tpu.matmul %67, %68, %cst_21 {dimension_numbers = #tpu.dot_dimension_numbers<[2], [2], [1], [1], [0, 0, 0, 1, 1, 1], [0], [0]>} : vector<1x16x128xbf16>, vector<1x8x128xbf16>, vector<1x16x8xf32> -> vector<1x16x8xf32>
    "tpu.trace_stop"() : () -> ()
    %cst_22 = arith.constant 0.0883883461 : f32
    %70 = vector.broadcast %cst_22 : f32 to vector<1x16x8xf32>
    %71 = arith.mulf %69, %70 : vector<1x16x8xf32>
    %cst_23 = arith.constant 5.000000e-01 : f32
    %72 = vector.broadcast %cst_23 : f32 to vector<1x16x8xf32>
    %73 = arith.cmpf ogt, %52, %72 : vector<1x16x8xf32>
    %cst_24 = arith.constant -1.000000e+30 : f32
    %74 = vector.broadcast %cst_24 : f32 to vector<1x16x8xf32>
    %75 = arith.select %73, %71, %74 : vector<1x16x8xi1>, vector<1x16x8xf32>
    %cst_25 = arith.constant dense<0xFF800000> : vector<1x16xf32>
    %76 = vector.multi_reduction <maximumf>, %75, %cst_25 [2] : vector<1x16x8xf32> to vector<1x16xf32>
    %77 = vector.shape_cast %76 : vector<1x16xf32> to vector<1x16x1xf32>
    %78 = vector.broadcast %77 : vector<1x16x1xf32> to vector<1x16x8xf32>
    %79 = arith.subf %75, %78 : vector<1x16x8xf32>
    %80 = math.exp %79 : vector<1x16x8xf32>
    %81 = arith.mulf %80, %52 : vector<1x16x8xf32>
    %cst_26 = arith.constant dense<0.000000e+00> : vector<1x16xf32>
    %82 = vector.multi_reduction <add>, %81, %cst_26 [2] : vector<1x16x8xf32> to vector<1x16xf32>
    %83 = vector.shape_cast %82 : vector<1x16xf32> to vector<1x16x1xf32>
    %cst_27 = arith.constant 1.000000e-30 : f32
    %84 = vector.broadcast %cst_27 : f32 to vector<1x16x1xf32>
    %85 = arith.addf %83, %84 : vector<1x16x1xf32>
    %86 = tpu.reciprocal %85 {approx = true} : vector<1x16x1xf32> -> vector<1x16x1xf32>
    %87 = vector.broadcast %86 : vector<1x16x1xf32> to vector<1x16x8xf32>
    %88 = arith.mulf %81, %87 : vector<1x16x8xf32>
    %89 = arith.truncf %88 : vector<1x16x8xf32> to vector<1x16x8xbf16>
    %90 = arith.truncf %66 : vector<1x8x128xf32> to vector<1x8x128xbf16>
    "tpu.trace_start"() <{level = 10 : i32, message = "bqk,bkd->bqd"}> : () -> ()
    %cst_28 = arith.constant dense<0.000000e+00> : vector<1x16x128xf32>
    %91 = tpu.matmul %89, %90, %cst_28 {dimension_numbers = #tpu.dot_dimension_numbers<[2], [1], [1], [2], [0, 0, 0, 1, 1, 2], [0], [0]>} : vector<1x16x8xbf16>, vector<1x8x128xbf16>, vector<1x16x128xf32> -> vector<1x16x128xf32>
    "tpu.trace_stop"() : () -> ()
    %92 = vector.shape_cast %91 : vector<1x16x128xf32> to vector<16x128xf32>
    %c0_29 = arith.constant 0 : index
    %c0_30 = arith.constant 0 : index
    %c0_31 = arith.constant 0 : index
    %93 = vector.load %arg6[%c0_29, %c0_30, %c0_31] : memref<2x128x128xbf16, #tpu.memory_space<vmem>>, vector<1x128x128xbf16>
    %94 = vector.shape_cast %93 : vector<1x128x128xbf16> to vector<128x128xbf16>
    %95 = arith.truncf %92 : vector<16x128xf32> to vector<16x128xbf16>
    %cst_32 = arith.constant dense<0.000000e+00> : vector<16x128xf32>
    %96 = tpu.matmul %95, %94, %cst_32 {dimension_numbers = #tpu.dot_dimension_numbers<[1], [0], [0], [1], [0, 0, 1, 1], [], []>} : vector<16x128xbf16>, vector<128x128xbf16>, vector<16x128xf32> -> vector<16x128xf32>
    %97 = arith.addf %51, %96 : vector<16x128xf32>
    %cst_33 = arith.constant dense<0.000000e+00> : vector<16xf32>
    %98 = vector.multi_reduction <add>, %97, %cst_33 [1] : vector<16x128xf32> to vector<16xf32>
    %99 = vector.shape_cast %98 : vector<16xf32> to vector<16x1xf32>
    %cst_34 = arith.constant 1.280000e+02 : f32
    %100 = vector.broadcast %cst_34 : f32 to vector<16x1xf32>
    %101 = arith.divf %99, %100 : vector<16x1xf32>
    %102 = vector.broadcast %101 : vector<16x1xf32> to vector<16x128xf32>
    %103 = arith.subf %97, %102 : vector<16x128xf32>
    %104 = arith.mulf %103, %103 : vector<16x128xf32>
    %cst_35 = arith.constant dense<0.000000e+00> : vector<16xf32>
    %105 = vector.multi_reduction <add>, %104, %cst_35 [1] : vector<16x128xf32> to vector<16xf32>
    %106 = vector.shape_cast %105 : vector<16xf32> to vector<16x1xf32>
    %cst_36 = arith.constant 1.280000e+02 : f32
    %107 = vector.broadcast %cst_36 : f32 to vector<16x1xf32>
    %108 = arith.divf %106, %107 : vector<16x1xf32>
    %109 = vector.broadcast %101 : vector<16x1xf32> to vector<16x128xf32>
    %110 = arith.subf %97, %109 : vector<16x128xf32>
    %cst_37 = arith.constant 9.99999996E-13 : f32
    %111 = vector.broadcast %cst_37 : f32 to vector<16x1xf32>
    %112 = arith.addf %108, %111 : vector<16x1xf32>
    %113 = math.rsqrt %112 : vector<16x1xf32>
    %114 = vector.broadcast %113 : vector<16x1xf32> to vector<16x128xf32>
    %115 = arith.mulf %110, %114 : vector<16x128xf32>
    %116 = vector.broadcast %53 : vector<1x128xf32> to vector<16x128xf32>
    %117 = arith.mulf %115, %116 : vector<16x128xf32>
    %118 = vector.broadcast %54 : vector<1x128xf32> to vector<16x128xf32>
    %119 = arith.addf %117, %118 : vector<16x128xf32>
    %c0_38 = arith.constant 0 : index
    %c0_39 = arith.constant 0 : index
    %c0_40 = arith.constant 0 : index
    %120 = vector.load %arg7[%c0_38, %c0_39, %c0_40] : memref<2x128x256xbf16, #tpu.memory_space<vmem>>, vector<1x128x256xbf16>
    %121 = vector.shape_cast %120 : vector<1x128x256xbf16> to vector<128x256xbf16>
    %122 = arith.truncf %119 : vector<16x128xf32> to vector<16x128xbf16>
    %cst_41 = arith.constant dense<0.000000e+00> : vector<16x256xf32>
    %123 = tpu.matmul %122, %121, %cst_41 {dimension_numbers = #tpu.dot_dimension_numbers<[1], [0], [0], [1], [0, 0, 1, 1], [], []>} : vector<16x128xbf16>, vector<128x256xbf16>, vector<16x256xf32> -> vector<16x256xf32>
    %124 = vector.broadcast %55 : vector<1x256xf32> to vector<16x256xf32>
    %125 = arith.addf %123, %124 : vector<16x256xf32>
    %126 = arith.mulf %125, %125 : vector<16x256xf32>
    %127 = arith.mulf %125, %126 : vector<16x256xf32>
    %cst_42 = arith.constant 4.471500e-02 : f32
    %128 = vector.broadcast %cst_42 : f32 to vector<16x256xf32>
    %129 = arith.mulf %128, %127 : vector<16x256xf32>
    %130 = arith.addf %125, %129 : vector<16x256xf32>
    %cst_43 = arith.constant 0.797884583 : f32
    %131 = vector.broadcast %cst_43 : f32 to vector<16x256xf32>
    %132 = arith.mulf %131, %130 : vector<16x256xf32>
    %133 = math.tanh %132 : vector<16x256xf32>
    %cst_44 = arith.constant 1.000000e+00 : f32
    %134 = vector.broadcast %cst_44 : f32 to vector<16x256xf32>
    %135 = arith.addf %134, %133 : vector<16x256xf32>
    %cst_45 = arith.constant 5.000000e-01 : f32
    %136 = vector.broadcast %cst_45 : f32 to vector<16x256xf32>
    %137 = arith.mulf %136, %135 : vector<16x256xf32>
    %138 = arith.mulf %125, %137 : vector<16x256xf32>
    %c0_46 = arith.constant 0 : index
    %c0_47 = arith.constant 0 : index
    %c0_48 = arith.constant 0 : index
    %139 = vector.load %arg8[%c0_46, %c0_47, %c0_48] : memref<2x256x128xbf16, #tpu.memory_space<vmem>>, vector<1x256x128xbf16>
    %140 = vector.shape_cast %139 : vector<1x256x128xbf16> to vector<256x128xbf16>
    %141 = arith.truncf %138 : vector<16x256xf32> to vector<16x256xbf16>
    %cst_49 = arith.constant dense<0.000000e+00> : vector<16x128xf32>
    %142 = tpu.matmul %141, %140, %cst_49 {dimension_numbers = #tpu.dot_dimension_numbers<[1], [0], [0], [1], [0, 0, 1, 1], [], []>} : vector<16x256xbf16>, vector<256x128xbf16>, vector<16x128xf32> -> vector<16x128xf32>
    %143 = arith.addf %119, %142 : vector<16x128xf32>
    %144 = vector.broadcast %56 : vector<1x128xf32> to vector<16x128xf32>
    %145 = arith.addf %143, %144 : vector<16x128xf32>
    %cst_50 = arith.constant dense<0.000000e+00> : vector<16xf32>
    %146 = vector.multi_reduction <add>, %145, %cst_50 [1] : vector<16x128xf32> to vector<16xf32>
    %147 = vector.shape_cast %146 : vector<16xf32> to vector<16x1xf32>
    %cst_51 = arith.constant 1.280000e+02 : f32
    %148 = vector.broadcast %cst_51 : f32 to vector<16x1xf32>
    %149 = arith.divf %147, %148 : vector<16x1xf32>
    %150 = vector.broadcast %149 : vector<16x1xf32> to vector<16x128xf32>
    %151 = arith.subf %145, %150 : vector<16x128xf32>
    %152 = arith.mulf %151, %151 : vector<16x128xf32>
    %cst_52 = arith.constant dense<0.000000e+00> : vector<16xf32>
    %153 = vector.multi_reduction <add>, %152, %cst_52 [1] : vector<16x128xf32> to vector<16xf32>
    %154 = vector.shape_cast %153 : vector<16xf32> to vector<16x1xf32>
    %cst_53 = arith.constant 1.280000e+02 : f32
    %155 = vector.broadcast %cst_53 : f32 to vector<16x1xf32>
    %156 = arith.divf %154, %155 : vector<16x1xf32>
    %157 = vector.broadcast %149 : vector<16x1xf32> to vector<16x128xf32>
    %158 = arith.subf %145, %157 : vector<16x128xf32>
    %cst_54 = arith.constant 9.99999996E-13 : f32
    %159 = vector.broadcast %cst_54 : f32 to vector<16x1xf32>
    %160 = arith.addf %156, %159 : vector<16x1xf32>
    %161 = math.rsqrt %160 : vector<16x1xf32>
    %162 = vector.broadcast %161 : vector<16x1xf32> to vector<16x128xf32>
    %163 = arith.mulf %158, %162 : vector<16x128xf32>
    %164 = vector.broadcast %57 : vector<1x128xf32> to vector<16x128xf32>
    %165 = arith.mulf %163, %164 : vector<16x128xf32>
    %166 = vector.broadcast %58 : vector<1x128xf32> to vector<16x128xf32>
    %167 = arith.addf %165, %166 : vector<16x128xf32>
    %c8 = arith.constant 8 : index
    %c0_55 = arith.constant 0 : index
    %168 = vector.load %arg4[%c8, %c0_55] : memref<14x256xf32, #tpu.memory_space<vmem>>, vector<1x128xf32>
    %c9 = arith.constant 9 : index
    %c0_56 = arith.constant 0 : index
    %169 = vector.load %arg4[%c9, %c0_56] : memref<14x256xf32, #tpu.memory_space<vmem>>, vector<1x128xf32>
    %c10 = arith.constant 10 : index
    %c0_57 = arith.constant 0 : index
    %170 = vector.load %arg4[%c10, %c0_57] : memref<14x256xf32, #tpu.memory_space<vmem>>, vector<1x256xf32>
    %c11 = arith.constant 11 : index
    %c0_58 = arith.constant 0 : index
    %171 = vector.load %arg4[%c11, %c0_58] : memref<14x256xf32, #tpu.memory_space<vmem>>, vector<1x128xf32>
    %c12 = arith.constant 12 : index
    %c0_59 = arith.constant 0 : index
    %172 = vector.load %arg4[%c12, %c0_59] : memref<14x256xf32, #tpu.memory_space<vmem>>, vector<1x128xf32>
    %c13 = arith.constant 13 : index
    %c0_60 = arith.constant 0 : index
    %173 = vector.load %arg4[%c13, %c0_60] : memref<14x256xf32, #tpu.memory_space<vmem>>, vector<1x128xf32>
    %c1_61 = arith.constant 1 : index
    %c0_62 = arith.constant 0 : index
    %c0_63 = arith.constant 0 : index
    %174 = vector.load %arg5[%c1_61, %c0_62, %c0_63] : memref<2x128x384xbf16, #tpu.memory_space<vmem>>, vector<1x128x384xbf16>
    %175 = vector.shape_cast %174 : vector<1x128x384xbf16> to vector<128x384xbf16>
    %176 = arith.truncf %167 : vector<16x128xf32> to vector<16x128xbf16>
    %cst_64 = arith.constant dense<0.000000e+00> : vector<16x384xf32>
    %177 = tpu.matmul %176, %175, %cst_64 {dimension_numbers = #tpu.dot_dimension_numbers<[1], [0], [0], [1], [0, 0, 1, 1], [], []>} : vector<16x128xbf16>, vector<128x384xbf16>, vector<16x384xf32> -> vector<16x384xf32>
    %178 = vector.shape_cast %177 : vector<16x384xf32> to vector<1x16x384xf32>
    %179 = vector.extract_strided_slice %178 {offsets = [0, 0, 0], sizes = [1, 16, 128], strides = [1, 1, 1]} : vector<1x16x384xf32> to vector<1x16x128xf32>
    %180 = vector.extract_strided_slice %178 {offsets = [0, 0, 128], sizes = [1, 8, 128], strides = [1, 1, 1]} : vector<1x16x384xf32> to vector<1x8x128xf32>
    %181 = vector.extract_strided_slice %178 {offsets = [0, 0, 256], sizes = [1, 8, 128], strides = [1, 1, 1]} : vector<1x16x384xf32> to vector<1x8x128xf32>
    %182 = arith.truncf %179 : vector<1x16x128xf32> to vector<1x16x128xbf16>
    %183 = arith.truncf %180 : vector<1x8x128xf32> to vector<1x8x128xbf16>
    "tpu.trace_start"() <{level = 10 : i32, message = "bqd,bkd->bqk"}> : () -> ()
    %cst_65 = arith.constant dense<0.000000e+00> : vector<1x16x8xf32>
    %184 = tpu.matmul %182, %183, %cst_65 {dimension_numbers = #tpu.dot_dimension_numbers<[2], [2], [1], [1], [0, 0, 0, 1, 1, 1], [0], [0]>} : vector<1x16x128xbf16>, vector<1x8x128xbf16>, vector<1x16x8xf32> -> vector<1x16x8xf32>
    "tpu.trace_stop"() : () -> ()
    %cst_66 = arith.constant 0.0883883461 : f32
    %185 = vector.broadcast %cst_66 : f32 to vector<1x16x8xf32>
    %186 = arith.mulf %184, %185 : vector<1x16x8xf32>
    %cst_67 = arith.constant 5.000000e-01 : f32
    %187 = vector.broadcast %cst_67 : f32 to vector<1x16x8xf32>
    %188 = arith.cmpf ogt, %52, %187 : vector<1x16x8xf32>
    %cst_68 = arith.constant -1.000000e+30 : f32
    %189 = vector.broadcast %cst_68 : f32 to vector<1x16x8xf32>
    %190 = arith.select %188, %186, %189 : vector<1x16x8xi1>, vector<1x16x8xf32>
    %cst_69 = arith.constant dense<0xFF800000> : vector<1x16xf32>
    %191 = vector.multi_reduction <maximumf>, %190, %cst_69 [2] : vector<1x16x8xf32> to vector<1x16xf32>
    %192 = vector.shape_cast %191 : vector<1x16xf32> to vector<1x16x1xf32>
    %193 = vector.broadcast %192 : vector<1x16x1xf32> to vector<1x16x8xf32>
    %194 = arith.subf %190, %193 : vector<1x16x8xf32>
    %195 = math.exp %194 : vector<1x16x8xf32>
    %196 = arith.mulf %195, %52 : vector<1x16x8xf32>
    %cst_70 = arith.constant dense<0.000000e+00> : vector<1x16xf32>
    %197 = vector.multi_reduction <add>, %196, %cst_70 [2] : vector<1x16x8xf32> to vector<1x16xf32>
    %198 = vector.shape_cast %197 : vector<1x16xf32> to vector<1x16x1xf32>
    %cst_71 = arith.constant 1.000000e-30 : f32
    %199 = vector.broadcast %cst_71 : f32 to vector<1x16x1xf32>
    %200 = arith.addf %198, %199 : vector<1x16x1xf32>
    %201 = tpu.reciprocal %200 {approx = true} : vector<1x16x1xf32> -> vector<1x16x1xf32>
    %202 = vector.broadcast %201 : vector<1x16x1xf32> to vector<1x16x8xf32>
    %203 = arith.mulf %196, %202 : vector<1x16x8xf32>
    %204 = arith.truncf %203 : vector<1x16x8xf32> to vector<1x16x8xbf16>
    %205 = arith.truncf %181 : vector<1x8x128xf32> to vector<1x8x128xbf16>
    "tpu.trace_start"() <{level = 10 : i32, message = "bqk,bkd->bqd"}> : () -> ()
    %cst_72 = arith.constant dense<0.000000e+00> : vector<1x16x128xf32>
    %206 = tpu.matmul %204, %205, %cst_72 {dimension_numbers = #tpu.dot_dimension_numbers<[2], [1], [1], [2], [0, 0, 0, 1, 1, 2], [0], [0]>} : vector<1x16x8xbf16>, vector<1x8x128xbf16>, vector<1x16x128xf32> -> vector<1x16x128xf32>
    "tpu.trace_stop"() : () -> ()
    %207 = vector.shape_cast %206 : vector<1x16x128xf32> to vector<16x128xf32>
    %c1_73 = arith.constant 1 : index
    %c0_74 = arith.constant 0 : index
    %c0_75 = arith.constant 0 : index
    %208 = vector.load %arg6[%c1_73, %c0_74, %c0_75] : memref<2x128x128xbf16, #tpu.memory_space<vmem>>, vector<1x128x128xbf16>
    %209 = vector.shape_cast %208 : vector<1x128x128xbf16> to vector<128x128xbf16>
    %210 = arith.truncf %207 : vector<16x128xf32> to vector<16x128xbf16>
    %cst_76 = arith.constant dense<0.000000e+00> : vector<16x128xf32>
    %211 = tpu.matmul %210, %209, %cst_76 {dimension_numbers = #tpu.dot_dimension_numbers<[1], [0], [0], [1], [0, 0, 1, 1], [], []>} : vector<16x128xbf16>, vector<128x128xbf16>, vector<16x128xf32> -> vector<16x128xf32>
    %212 = arith.addf %167, %211 : vector<16x128xf32>
    %cst_77 = arith.constant dense<0.000000e+00> : vector<16xf32>
    %213 = vector.multi_reduction <add>, %212, %cst_77 [1] : vector<16x128xf32> to vector<16xf32>
    %214 = vector.shape_cast %213 : vector<16xf32> to vector<16x1xf32>
    %cst_78 = arith.constant 1.280000e+02 : f32
    %215 = vector.broadcast %cst_78 : f32 to vector<16x1xf32>
    %216 = arith.divf %214, %215 : vector<16x1xf32>
    %217 = vector.broadcast %216 : vector<16x1xf32> to vector<16x128xf32>
    %218 = arith.subf %212, %217 : vector<16x128xf32>
    %219 = arith.mulf %218, %218 : vector<16x128xf32>
    %cst_79 = arith.constant dense<0.000000e+00> : vector<16xf32>
    %220 = vector.multi_reduction <add>, %219, %cst_79 [1] : vector<16x128xf32> to vector<16xf32>
    %221 = vector.shape_cast %220 : vector<16xf32> to vector<16x1xf32>
    %cst_80 = arith.constant 1.280000e+02 : f32
    %222 = vector.broadcast %cst_80 : f32 to vector<16x1xf32>
    %223 = arith.divf %221, %222 : vector<16x1xf32>
    %224 = vector.broadcast %216 : vector<16x1xf32> to vector<16x128xf32>
    %225 = arith.subf %212, %224 : vector<16x128xf32>
    %cst_81 = arith.constant 9.99999996E-13 : f32
    %226 = vector.broadcast %cst_81 : f32 to vector<16x1xf32>
    %227 = arith.addf %223, %226 : vector<16x1xf32>
    %228 = math.rsqrt %227 : vector<16x1xf32>
    %229 = vector.broadcast %228 : vector<16x1xf32> to vector<16x128xf32>
    %230 = arith.mulf %225, %229 : vector<16x128xf32>
    %231 = vector.broadcast %168 : vector<1x128xf32> to vector<16x128xf32>
    %232 = arith.mulf %230, %231 : vector<16x128xf32>
    %233 = vector.broadcast %169 : vector<1x128xf32> to vector<16x128xf32>
    %234 = arith.addf %232, %233 : vector<16x128xf32>
    %c1_82 = arith.constant 1 : index
    %c0_83 = arith.constant 0 : index
    %c0_84 = arith.constant 0 : index
    %235 = vector.load %arg7[%c1_82, %c0_83, %c0_84] : memref<2x128x256xbf16, #tpu.memory_space<vmem>>, vector<1x128x256xbf16>
    %236 = vector.shape_cast %235 : vector<1x128x256xbf16> to vector<128x256xbf16>
    %237 = arith.truncf %234 : vector<16x128xf32> to vector<16x128xbf16>
    %cst_85 = arith.constant dense<0.000000e+00> : vector<16x256xf32>
    %238 = tpu.matmul %237, %236, %cst_85 {dimension_numbers = #tpu.dot_dimension_numbers<[1], [0], [0], [1], [0, 0, 1, 1], [], []>} : vector<16x128xbf16>, vector<128x256xbf16>, vector<16x256xf32> -> vector<16x256xf32>
    %239 = vector.broadcast %170 : vector<1x256xf32> to vector<16x256xf32>
    %240 = arith.addf %238, %239 : vector<16x256xf32>
    %241 = arith.mulf %240, %240 : vector<16x256xf32>
    %242 = arith.mulf %240, %241 : vector<16x256xf32>
    %cst_86 = arith.constant 4.471500e-02 : f32
    %243 = vector.broadcast %cst_86 : f32 to vector<16x256xf32>
    %244 = arith.mulf %243, %242 : vector<16x256xf32>
    %245 = arith.addf %240, %244 : vector<16x256xf32>
    %cst_87 = arith.constant 0.797884583 : f32
    %246 = vector.broadcast %cst_87 : f32 to vector<16x256xf32>
    %247 = arith.mulf %246, %245 : vector<16x256xf32>
    %248 = math.tanh %247 : vector<16x256xf32>
    %cst_88 = arith.constant 1.000000e+00 : f32
    %249 = vector.broadcast %cst_88 : f32 to vector<16x256xf32>
    %250 = arith.addf %249, %248 : vector<16x256xf32>
    %cst_89 = arith.constant 5.000000e-01 : f32
    %251 = vector.broadcast %cst_89 : f32 to vector<16x256xf32>
    %252 = arith.mulf %251, %250 : vector<16x256xf32>
    %253 = arith.mulf %240, %252 : vector<16x256xf32>
    %c1_90 = arith.constant 1 : index
    %c0_91 = arith.constant 0 : index
    %c0_92 = arith.constant 0 : index
    %254 = vector.load %arg8[%c1_90, %c0_91, %c0_92] : memref<2x256x128xbf16, #tpu.memory_space<vmem>>, vector<1x256x128xbf16>
    %255 = vector.shape_cast %254 : vector<1x256x128xbf16> to vector<256x128xbf16>
    %256 = arith.truncf %253 : vector<16x256xf32> to vector<16x256xbf16>
    %cst_93 = arith.constant dense<0.000000e+00> : vector<16x128xf32>
    %257 = tpu.matmul %256, %255, %cst_93 {dimension_numbers = #tpu.dot_dimension_numbers<[1], [0], [0], [1], [0, 0, 1, 1], [], []>} : vector<16x256xbf16>, vector<256x128xbf16>, vector<16x128xf32> -> vector<16x128xf32>
    %258 = arith.addf %234, %257 : vector<16x128xf32>
    %259 = vector.broadcast %171 : vector<1x128xf32> to vector<16x128xf32>
    %260 = arith.addf %258, %259 : vector<16x128xf32>
    %cst_94 = arith.constant dense<0.000000e+00> : vector<16xf32>
    %261 = vector.multi_reduction <add>, %260, %cst_94 [1] : vector<16x128xf32> to vector<16xf32>
    %262 = vector.shape_cast %261 : vector<16xf32> to vector<16x1xf32>
    %cst_95 = arith.constant 1.280000e+02 : f32
    %263 = vector.broadcast %cst_95 : f32 to vector<16x1xf32>
    %264 = arith.divf %262, %263 : vector<16x1xf32>
    %265 = vector.broadcast %264 : vector<16x1xf32> to vector<16x128xf32>
    %266 = arith.subf %260, %265 : vector<16x128xf32>
    %267 = arith.mulf %266, %266 : vector<16x128xf32>
    %cst_96 = arith.constant dense<0.000000e+00> : vector<16xf32>
    %268 = vector.multi_reduction <add>, %267, %cst_96 [1] : vector<16x128xf32> to vector<16xf32>
    %269 = vector.shape_cast %268 : vector<16xf32> to vector<16x1xf32>
    %cst_97 = arith.constant 1.280000e+02 : f32
    %270 = vector.broadcast %cst_97 : f32 to vector<16x1xf32>
    %271 = arith.divf %269, %270 : vector<16x1xf32>
    %272 = vector.broadcast %264 : vector<16x1xf32> to vector<16x128xf32>
    %273 = arith.subf %260, %272 : vector<16x128xf32>
    %cst_98 = arith.constant 9.99999996E-13 : f32
    %274 = vector.broadcast %cst_98 : f32 to vector<16x1xf32>
    %275 = arith.addf %271, %274 : vector<16x1xf32>
    %276 = math.rsqrt %275 : vector<16x1xf32>
    %277 = vector.broadcast %276 : vector<16x1xf32> to vector<16x128xf32>
    %278 = arith.mulf %273, %277 : vector<16x128xf32>
    %279 = vector.broadcast %172 : vector<1x128xf32> to vector<16x128xf32>
    %280 = arith.mulf %278, %279 : vector<16x128xf32>
    %281 = vector.broadcast %173 : vector<1x128xf32> to vector<16x128xf32>
    %282 = arith.addf %280, %281 : vector<16x128xf32>
    %283 = vector.shape_cast %282 : vector<16x128xf32> to vector<1x16x128xf32>
    %284 = vector.extract_strided_slice %283 {offsets = [0, 8, 0], sizes = [1, 8, 128], strides = [1, 1, 1]} : vector<1x16x128xf32> to vector<1x8x128xf32>
    %285 = vector.shape_cast %284 : vector<1x8x128xf32> to vector<8x128xf32>
    %c0_99 = arith.constant 0 : index
    %c0_100 = arith.constant 0 : index
    %286 = vector.load %arg9[%c0_99, %c0_100] : memref<128x128xbf16, #tpu.memory_space<vmem>>, vector<128x128xbf16>
    %287 = arith.truncf %285 : vector<8x128xf32> to vector<8x128xbf16>
    %cst_101 = arith.constant dense<0.000000e+00> : vector<8x128xf32>
    %288 = tpu.matmul %287, %286, %cst_101 {dimension_numbers = #tpu.dot_dimension_numbers<[1], [0], [0], [1], [0, 0, 1, 1], [], []>} : vector<8x128xbf16>, vector<128x128xbf16>, vector<8x128xf32> -> vector<8x128xf32>
    %289 = vector.broadcast %1 : vector<1x128xf32> to vector<8x128xf32>
    %290 = arith.addf %288, %289 : vector<8x128xf32>
    %291 = vector.shape_cast %290 : vector<8x128xf32> to vector<1x8x128xf32>
    %c0_102 = arith.constant 0 : index
    %c0_103 = arith.constant 0 : index
    %c0_104 = arith.constant 0 : index
    %292 = vector.load %arg10[%c0_102, %c0_103, %c0_104] : memref<1x8x128xf32, #tpu.memory_space<vmem>>, vector<1x8x128xf32>
    tpu.vector_store %arg10[%c0_102, %c0_103, %c0_104], %291 {strides = array<i32>} : memref<1x8x128xf32, #tpu.memory_space<vmem>>, vector<1x8x128xf32>,
    return
  }
  func.func @transform_0(%arg0: i32) -> (i32, i32, i32) {
    %c0_i32 = arith.constant 0 : i32
    %c0_i32_0 = arith.constant 0 : i32
    %c0_i32_1 = arith.constant 0 : i32
    return %arg0, %c0_i32, %c0_i32_0 : i32, i32, i32
  }
  func.func @transform_1(%arg0: i32) -> (i32, i32, i32) {
    %c0_i32 = arith.constant 0 : i32
    %c0_i32_0 = arith.constant 0 : i32
    %c0_i32_1 = arith.constant 0 : i32
    return %arg0, %c0_i32, %c0_i32_0 : i32, i32, i32
  }
  func.func @transform_2(%arg0: i32) -> (i32, i32) {
    %c0_i32 = arith.constant 0 : i32
    %c0_i32_0 = arith.constant 0 : i32
    %c0_i32_1 = arith.constant 0 : i32
    return %c0_i32, %c0_i32_0 : i32, i32
  }
  func.func @transform_3(%arg0: i32) -> (i32, i32) {
    %c0_i32 = arith.constant 0 : i32
    %c0_i32_0 = arith.constant 0 : i32
    %c0_i32_1 = arith.constant 0 : i32
    return %c0_i32, %c0_i32_0 : i32, i32
  }
  func.func @transform_4(%arg0: i32) -> (i32, i32, i32) {
    %c0_i32 = arith.constant 0 : i32
    %c0_i32_0 = arith.constant 0 : i32
    %c0_i32_1 = arith.constant 0 : i32
    %c0_i32_2 = arith.constant 0 : i32
    return %c0_i32, %c0_i32_0, %c0_i32_1 : i32, i32, i32
  }
  func.func @transform_5(%arg0: i32) -> (i32, i32, i32) {
    %c0_i32 = arith.constant 0 : i32
    %c0_i32_0 = arith.constant 0 : i32
    %c0_i32_1 = arith.constant 0 : i32
    %c0_i32_2 = arith.constant 0 : i32
    return %c0_i32, %c0_i32_0, %c0_i32_1 : i32, i32, i32
  }
  func.func @transform_6(%arg0: i32) -> (i32, i32, i32) {
    %c0_i32 = arith.constant 0 : i32
    %c0_i32_0 = arith.constant 0 : i32
    %c0_i32_1 = arith.constant 0 : i32
    %c0_i32_2 = arith.constant 0 : i32
    return %c0_i32, %c0_i32_0, %c0_i32_1 : i32, i32, i32
  }
  func.func @transform_7(%arg0: i32) -> (i32, i32, i32) {
    %c0_i32 = arith.constant 0 : i32
    %c0_i32_0 = arith.constant 0 : i32
    %c0_i32_1 = arith.constant 0 : i32
    %c0_i32_2 = arith.constant 0 : i32
    return %c0_i32, %c0_i32_0, %c0_i32_1 : i32, i32, i32
  }
  func.func @transform_8(%arg0: i32) -> (i32, i32) {
    %c0_i32 = arith.constant 0 : i32
    %c0_i32_0 = arith.constant 0 : i32
    %c0_i32_1 = arith.constant 0 : i32
    return %c0_i32, %c0_i32_0 : i32, i32
  }
  func.func @transform_9(%arg0: i32) -> (i32, i32, i32) {
    %c0_i32 = arith.constant 0 : i32
    %c0_i32_0 = arith.constant 0 : i32
    %c0_i32_1 = arith.constant 0 : i32
    return %arg0, %c0_i32, %c0_i32_0 : i32, i32, i32
  }
}

</mosaic_0001>

<bundles_post_ra>
// kernel: xlnet_forward.1
= control target key start
LH: loop header
LB: loop body
LE: loop exit
PB: predicated region body
PF: predicated region fallthrough
CT: control target
= control target key end

     0   :  { %14 = vsyncpa [#allocation3], 0  ;;  %s3923_s0 = inlined_call_operand.vmem [shape: s32[2,16,6], index: 0, kind: input, shape index: {}]   ;;  %s3924_s1 = inlined_call_operand.vmem [shape: f32[2,16,8], index: 1, kind: input, shape index: {}]   ;;  %s3925_s2 = inlined_call_operand.vmem [shape: bf16[128,128], index: 2, kind: input, shape index: {}]   ;;  %s3926_s3 = inlined_call_operand.vmem [shape: f32[14,256], index: 3, kind: input, shape index: {}]   ;;  %s3927_s4 = inlined_call_operand.hbm [shape: bf16[2,128,384], index: 4, kind: input, shape index: {}]   ;;  %s3928_s5 = inlined_call_operand.vmem [shape: bf16[2,128,128], index: 5, kind: input, shape index: {}]   ;;  %s3929_s6 = inlined_call_operand.hbm [shape: bf16[2,128,256], index: 6, kind: input, shape index: {}]   ;;  %s3930_s7 = inlined_call_operand.hbm [shape: bf16[2,256,128], index: 7, kind: input, shape index: {}]   ;;  %s3931_s8 = inlined_call_operand.hbm [shape: bf16[128,128], index: 8, kind: input, shape index: {}]   ;;  %s3932_s9 = inlined_call_operand.vmem [shape: f32[2,8,128], index: 9, kind: output, shape index: {}]  }
   0x1   :  { %15 = vsyncpa [#allocation5], 0 }
   0x2   :  { %16 = vsyncpa [#allocation8], 0  ;;  %s3535_s30 = smov 0  }
   0x3 LB: > { %s3467_s10 = smov [#allocation4]   ;;  %s3541_s12 = sadd.s32 4294967295, %s3465_s30   ;;  %s3465_s30 = sphi %s3535_s30, %s22_s30  }
   0x4   : > { %s286_s11 = sshll.u32 %s3467_s10, 4  ;;  %p2603_p0 = scmp.ge.s32.totalorder %s3465_s30, 1  ;;  %s287_s11 = int_to_ptr.vmem [resolvable:$true] %s286_s11 }
   0x5   : > { %p252_p1 = scmp.lt.s32.totalorder %s3465_s30, 3  ;;  %p3078_p2 = scmp.eq.s32.totalorder %s3541_s12, 0 }
   0x6   : > { %s3468_s14 = smov [#allocation2]   ;;  %s3469_s17 = smov [#allocation6]  }
   0x7   : > { %p3546_p3 = pnand %p2603_p0, %p252_p1  ;;  %s270_s15 = sshll.u32 %s3468_s14, 4  ;;  %s3552_s15 = int_to_ptr.vmem [resolvable:$true] %s270_s15 }
   0x8   : > { %s3560_s18 = sshll.u32 %s3469_s17, 4  ;;  %s3354_s19 = scalar_lea.vmem %s287_s11, 4096  ;;  %s300_s18 = int_to_ptr.vmem [resolvable:$true] %s3560_s18 }
   0x9   : > { %p3065_p4 = pneg %p3546_p3  ;;  %p3355_p7 = scmp.ne.s32.totalorder %s287_s11, %s3354_s19 }
   0xa   : > { %p3362_p10 = scmp.lt.s32.totalorder %s287_s11, %s287_s11  ;;  %p3363_p11 = scmp.lt.s32.totalorder %s3354_s19, %s3354_s19 }
   0xb   : > { %p3556_p5 = pnand %p3078_p2, %p3065_p4 }
   0xc   : > { %p3364_p12 = por %p3363_p11, %p3362_p10 }
   0xd   : > { %p3345_p6 = pneg %p3556_p5 }
   0xf   : > { %p3357_p8 = pnand %p3355_p7, %p3345_p6 }
  0x11   : > { %p3358_p9 = pneg %p3357_p8 }
  0x13   : > { %p3365_p13 = pnand %p3364_p12, %p3358_p9 }
  0x15   : > { %3368 = shalt.err (!%p3365_p13)
}
  0x16   : > { %s3470_s20 = smov 128   ;;  %s3471_s21 = smov 8  }
  0x17   : > { %3071 = dma.hbm_to_vmem [thread:$0]  (!%p3556_p5), %s3929_s6, 4096, %s287_s11, [#allocation5], %s3470_s20, %s3470_s20, %s3471_s21  }
  0x18   : > { %s3380_s24 = scalar_lea.vmem %s3552_s15, 6144  ;;  %p3388_p7 = scmp.lt.s32.totalorder %s3552_s15, %s3552_s15 }
  0x19   : > { %p3381_p0 = scmp.ne.s32.totalorder %s3552_s15, %s3380_s24  ;;  %p3389_p8 = scmp.lt.s32.totalorder %s3380_s24, %s3380_s24 }
  0x1b   : > { %p3383_p1 = pnand %p3381_p0, %p3345_p6  ;;  %p3390_p9 = por %p3389_p8, %p3388_p7 }
  0x1d   : > { %p3384_p4 = pneg %p3383_p1 }
  0x1f   : > { %p3391_p10 = pnand %p3390_p9, %p3384_p4 }
  0x21   : > { %3394 = shalt.err (!%p3391_p10)
}
  0x22   : > { %s3472_s25 = smov 192   ;;  %s3473_s26 = smov 12  }
  0x23   : > { %3068 = dma.hbm_to_vmem [thread:$0]  (!%p3556_p5), %s3927_s4, 6144, %s3552_s15, [#allocation3], %s3472_s25, %s3472_s25, %s3473_s26  }
  0x24   : > { %s3406_s29 = scalar_lea.vmem %s300_s18, 4096  ;;  %p3414_p0 = scmp.lt.s32.totalorder %s300_s18, %s300_s18 }
  0x25   : > { %p3407_p11 = scmp.ne.s32.totalorder %s300_s18, %s3406_s29  ;;  %p3415_p1 = scmp.lt.s32.totalorder %s3406_s29, %s3406_s29 }
  0x27   : > { %p3409_p12 = pnand %p3407_p11, %p3345_p6  ;;  %p3416_p4 = por %p3415_p1, %p3414_p0 }
  0x29   : > { %p3410_p13 = pneg %p3409_p12 }
  0x2b   : > { %p3417_p7 = pnand %p3416_p4, %p3410_p13 }
  0x2d   : > { %3420 = shalt.err (!%p3417_p7)
}
  0x2e   : > { %s3474_s10 = smov 64   ;;  %s3475_s11 = smov 4  }
  0x2f   : > { %3074 = dma.hbm_to_vmem [thread:$0]  (!%p3556_p5), %s3930_s7, 4096, %s300_s18, [#allocation5], %s3474_s10, %s3474_s10, %s3475_s11  }
  0x30   : > { %s3476_s15 = smov [#allocation7]  }
  0x31   : > { %s312_s19 = sshll.u32 %s3476_s15, 4  ;;  %s313_s19 = int_to_ptr.vmem [resolvable:$true] %s312_s19 }
  0x32   : > { %s3432_s20 = scalar_lea.vmem %s313_s19, 1024  ;;  %p3440_p11 = scmp.lt.s32.totalorder %s313_s19, %s313_s19 }
  0x33   : > { %p3433_p8 = scmp.ne.s32.totalorder %s313_s19, %s3432_s20  ;;  %p3441_p12 = scmp.lt.s32.totalorder %s3432_s20, %s3432_s20 }
  0x35   : > { %p3435_p9 = pnand %p3433_p8, %p3345_p6  ;;  %p3442_p13 = por %p3441_p12, %p3440_p11 }
  0x37   : > { %p3436_p10 = pneg %p3435_p9 }
  0x39   : > { %p3443_p0 = pnand %p3442_p13, %p3436_p10 }
  0x3b   : > { %3446 = shalt.err (!%p3443_p0)
}
  0x3c   : > { %3077 = dma.hbm_to_vmem [thread:$0]  (!%p3556_p5), %s3931_s8, 1024, %s313_s19, [#allocation8], %s3474_s10, %s3474_s10, %s3475_s11  }
  0x3d   : > { %344 = sbr.rel (%p3546_p3) target bundleno = 4985 (0x1379), region = 56 }
  0x42   : > { %3452 = dma.done.wait (%p3078_p2), [#allocation3], 6144  }
  0x43   : > { %3454 = vsyncadd (%p3078_p2), [#allocation3], 4294961152 }
  0x44   : > { %3456 = dma.done.wait (%p3078_p2), [#allocation5], 8192  }
  0x45   : > { %3458 = vsyncadd (%p3078_p2), [#allocation5], 4294959104 }
  0x46   : > { %3460 = dma.done.wait (%p3078_p2), [#allocation8], 1024  }
  0x47   : > { %3462 = vsyncadd (%p3078_p2), [#allocation8], 4294966272  ;;  %p396_p3 = scmp.lt.s32.totalorder %s3541_s12, 1  ;;  %v3477_v0 = vmov 1   ;;  %v3478_v1 = vmov 0   ;;  %v3479_v2 = vmov 0.0   ;;  %v415_v31 = vlaneseq }
  0x48   : > { %3113 = vset.pattern.permute.xlu1 %v3477_v0  ;;  %3112 = vset.pattern.permute.xlu0 %v3478_v1  ;;  %v3121_v5 = vld [vmem:[%s3925_s2 + $0x38] sm:$0xff]   ;;  %v3122_v6 = vld [vmem:[%s3925_s2 + $0x30] sm:$0xff]   ;;  %v3123_v7 = vld [vmem:[%s3925_s2 + $0x28] sm:$0xff]   ;;  %v3480_v8 = vmov 2   ;;  %v3481_v10 = vmov 3   ;;  %v3482_v12 = vmov 4  }
  0x49   : > { %s3936_s12 = smov (!%p396_p3, %s3541_s12), 1  ;;  %2905 = vmatprep.subr.bf16.mxu0 %v3479_v2  ;;  %808 = vmatprep.mubr.bf16.mxu1 %v3478_v1  ;;  %v3124_v9 = vld [vmem:[%s3925_s2 + $0x20] sm:$0xff]   ;;  %v3125_v11 = vld [vmem:[%s3925_s2 + $0x18] sm:$0xff]   ;;  %v3483_v13 = vmov 5   ;;  %v3126_v14 = vld [vmem:[%s3925_s2 + $0x10] sm:$0xff]   ;;  %vm3484_vm0 = vmmov 0  }
  0x4a   : > { %s2797_s13 = sshll.u32 %s3936_s12, 4  ;;  %2906 = vmatpush3.bf16.msra.mxu0 %v3121_v5  ;;  %v3127_v15 = vld [vmem:[%s3925_s2 + $0x8] sm:$0xff]   ;;  %v3128_v16 = vld [vmem:[%s3925_s2] sm:$0xff]   ;;  %2921 = vmatprep.mubr.msk.bf16.mxu0 %vm3484_vm0, %v3479_v2  ;;  %v3135_v20 = vld [vmem:[#allocation2 + $0x90] ss:$12 sps:$4 sm:$0xff]   ;;  %v416_v34 = vand.u32 127, %v415_v31 }
  0x4b   : > { %s400_s23 = scalar_lea.vmem %s3923_s0, %s2797_s13  ;;  %2907 = vmatprep.subr.bf16.mxu0 %v3479_v2  ;;  %v3129_v17 = vld [vmem:[#allocation2 + $0xac] ss:$12 sps:$4 sm:$0xff]   ;;  %v3131_v18 = vld [vmem:[#allocation2 + $0xa8] ss:$12 sps:$4 sm:$0xff]   ;;  %v3141_v23 = vld [vmem:[#allocation2 + $0x64] ss:$12 sps:$4 sm:$0xff]   ;;  %s405_s26 = scalar_lea.vmem %s3924_s1, %s2797_s13 }
  0x4c   : > { %v413_v3 = vld [vmem:[%s400_s23] sm:$0xff]  ;;  %v414_v4 = vld [vmem:[%s400_s23 + $0x8] sm:$0xff]  ;;  %776 = vmatprep.subr.bf16.mxu1 %v3129_v17  ;;  %v3151_v28 = vld [vmem:[#allocation2 + $0x30] ss:$12 sps:$4 sm:$0xff]   ;;  %vm939_vm13 = vcmask 1043456   ;;  %vm907_vm15 = vcmask 64512  }
  0x4d   : > { %432 = vperm.xlu1 %3113, %v413_v3   ;;  %418 = vperm.xlu0 %3112, %v413_v3   ;;  %v3133_v19 = vld [vmem:[#allocation2 + $0x94] ss:$12 sps:$4 sm:$0xff]   ;;  %v3137_v21 = vld [vmem:[#allocation2 + $0x7c] ss:$12 sps:$4 sm:$0xff]   ;;  %v3139_v22 = vld [vmem:[#allocation2 + $0x78] ss:$12 sps:$4 sm:$0xff]  }
  0x4e   : > { %2908 = vmatpush3.bf16.msra.mxu0 %v3122_v6  ;;  %777 = vmatpush1.bf16.msra.mxu1 %v3131_v18  ;;  %v3143_v24 = vld [vmem:[#allocation2 + $0x60] ss:$12 sps:$4 sm:$0xff]   ;;  %v3147_v26 = vld [vmem:[#allocation2 + $0x48] ss:$12 sps:$4 sm:$0xff]   ;;  %v3136_v6 = vld [vmem:[#allocation2 + $0x98] ss:$12 sps:$4 sm:$0xff]  }
  0x4f   : > { %2909 = vmatprep.subr.bf16.mxu0 %v3479_v2  ;;  %778 = vmatprep.subr.bf16.mxu1 %v3133_v19  ;;  %v3145_v25 = vld [vmem:[#allocation2 + $0x4c] ss:$12 sps:$4 sm:$0xff]   ;;  %v3149_v27 = vld [vmem:[#allocation2 + $0x34] ss:$12 sps:$4 sm:$0xff]  }
  0x50   : > { %v411_v18 = vld [vmem:[%s3926_s3] ss:$0 sm:$0xff] }
  0x51   : > { %435 = vperm.xlu1 %3113, %v414_v4   ;;  %421 = vperm.xlu0 %3112, %v414_v4  }
  0x52   : > { %2910 = vmatpush3.bf16.msra.mxu0 %v3123_v7  ;;  %779 = vmatpush1.bf16.msra.mxu1 %v3135_v20  ;;  %v3140_v7 = vld [vmem:[#allocation2 + $0x80] ss:$12 sps:$4 sm:$0xff]  }
  0x53   : > { %2911 = vmatprep.subr.bf16.mxu0 %v3479_v2  ;;  %780 = vmatprep.subr.bf16.mxu1 %v3137_v21 }
  0x55   : > { %3115 = vset.pattern.permute.xlu1 %v3480_v8  ;;  %3114 = vset.pattern.permute.xlu0 %v3480_v8  ;;  %v3144_v8 = vld [vmem:[#allocation2 + $0x68] ss:$12 sps:$4 sm:$0xff]  }
  0x56   : > { %449 = vperm.xlu1 %3115, %v414_v4   ;;  %446 = vperm.xlu0 %3114, %v413_v3  }
  0x57   : > { %2912 = vmatpush3.bf16.msra.mxu0 %v3124_v9  ;;  %781 = vmatpush1.bf16.msra.mxu1 %v3139_v22  ;;  %v3148_v9 = vld [vmem:[#allocation2 + $0x50] ss:$12 sps:$4 sm:$0xff]  }
  0x58   : > { %2913 = vmatprep.subr.bf16.mxu0 %v3479_v2  ;;  %782 = vmatprep.subr.bf16.mxu1 %v3141_v23 }
  0x5a   : > { %3116 = vset.pattern.permute.xlu1 %v3481_v10  ;;  %3117 = vset.pattern.permute.xlu0 %v3481_v10  ;;  %v3152_v10 = vld [vmem:[#allocation2 + $0x38] ss:$12 sps:$4 sm:$0xff]  }
  0x5b   : > { %460 = vperm.xlu1 %3116, %v413_v3   ;;  %463 = vperm.xlu0 %3117, %v414_v4  }
  0x5c   : > { %2914 = vmatpush3.bf16.msra.mxu0 %v3125_v11  ;;  %783 = vmatpush1.bf16.msra.mxu1 %v3143_v24  ;;  %v3153_v11 = vld [vmem:[#allocation2 + $0x1c] ss:$12 sps:$4 sm:$0xff]  }
  0x5d   : > { %2915 = vmatprep.subr.bf16.mxu0 %v3479_v2  ;;  %784 = vmatprep.subr.bf16.mxu1 %v3145_v25 }
  0x5f   : > { %3118 = vset.pattern.permute.xlu1 %v3482_v12  ;;  %3119 = vset.pattern.permute.xlu0 %v3483_v13  ;;  %v3155_v12 = vld [vmem:[#allocation2 + $0x18] ss:$12 sps:$4 sm:$0xff]  }
  0x60   : > { %474 = vperm.xlu1 %3118, %v413_v3   ;;  %488 = vperm.xlu0 %3119, %v413_v3  }
  0x61   : > { %2916 = vmatpush3.bf16.msra.mxu0 %v3126_v14  ;;  %785 = vmatpush1.bf16.msra.mxu1 %v3147_v26  ;;  %v3157_v14 = vld [vmem:[#allocation2 + $0x4] ss:$12 sps:$4 sm:$0xff]  }
  0x62   : > { %2917 = vmatprep.subr.bf16.mxu0 %v3479_v2  ;;  %786 = vmatprep.subr.bf16.mxu1 %v3149_v27 }
  0x64   : > { %477 = vperm.xlu1 %3118, %v414_v4  }
  0x65   : > { %2918 = vmatpush3.bf16.msra.mxu0 %v3127_v15  ;;  %787 = vmatpush1.bf16.msra.mxu1 %v3151_v28  ;;  %v3159_v15 = vld [vmem:[#allocation2] ss:$12 sps:$4 sm:$0xff]  }
  0x66   : > { %2919 = vmatprep.subr.bf16.mxu0 %v3479_v2  ;;  %788 = vmatprep.subr.bf16.mxu1 %v3153_v11  ;;  %v3163_v11 = vld [vmem:[%s3928_s5 + $0x28] sm:$0xff]  }
  0x68   : > { %3120 = vset.pattern.permute.xlu1 %v3483_v13  ;;  %v3156_v13 = vld [vmem:[#allocation2 + $0x20] ss:$12 sps:$4 sm:$0xff]  }
  0x69   : > { %491 = vperm.xlu1 %3120, %v414_v4   ;;  %2920 = vmatpush3.bf16.msra.mxu0 %v3128_v16  ;;  %v3132_v4 = vld [vmem:[#allocation2 + $0xb0] ss:$12 sps:$4 sm:$0xff]   ;;  %v3160_v16 = vld [vmem:[#allocation2 + $0x8] ss:$12 sps:$4 sm:$0xff]  }
  0x6a   : > { %2925 = vmatprep.subr.bf16.mxu0 %v3479_v2  ;;  %789 = vmatpush1.bf16.msra.mxu1 %v3155_v12  ;;  %v3164_v12 = vld [vmem:[%s3928_s5 + $0x20] sm:$0xff]  }
  0x6b   : > { %790 = vmatprep.subr.bf16.mxu1 %v3157_v14  ;;  %v3166_v14 = vld [vmem:[%s3928_s5 + $0x10] sm:$0xff]  }
  0x6e   : > { %791 = vmatpush1.bf16.msra.mxu1 %v3159_v15  ;;  %v3167_v15 = vld [vmem:[%s3928_s5 + $0x8] sm:$0xff]  }
  0x6f   : > { %2945 = vmatprep.subr.bf16.mxu1 %v3479_v2 }
  0xc8   : > { %v433_v29 = vpop.permute.xlu1 %432  ;;  %v419_v30 = vpop.permute.xlu0 %418 }
  0xc9   : > { %vm423_vm1 = vcmp.eq.s32.totalorder %v416_v34, %v419_v30  ;;  %vm437_vm4 = vcmp.eq.s32.totalorder %v416_v34, %v433_v29 }
  0xca   : > { %v2619_v37 = vsel %vm423_vm1, 1.0, %v3479_v2  ;;  %v2621_v45 = vsel %vm437_vm4, 1.0, %v3479_v2 }
  0xcc   : > { %v436_v32 = vpop.permute.xlu1 %435  ;;  %v422_v33 = vpop.permute.xlu0 %421 }
  0xcd   : > { %vm424_vm2 = vcmp.eq.s32.totalorder %v416_v34, %v422_v33  ;;  %vm438_vm3 = vcmp.eq.s32.totalorder %v416_v34, %v436_v32 }
  0xce   : > { %v2620_v38 = vsel %vm424_vm2, 1.0, %v3479_v2  ;;  %v2622_v42 = vsel %vm438_vm3, 1.0, %v3479_v2 }
  0xcf   : > { %v429_v40 = vpack.c.bf16 %v2620_v38, %v2619_v37  ;;  %v443_v48 = vpack.c.bf16 %v2622_v42, %v2621_v45  ;;  %v3708_v38 = vld [vmem:[%s405_s26] sm:$0xff] }
  0xd0   : > { %vm903_vm14 = vcmp.gt.f32.partialorder %v3708_v38, 0.5 }
  0xd1   : > { %v450_v35 = vpop.permute.xlu1 %449  ;;  %v447_v36 = vpop.permute.xlu0 %446  ;;  %v430_v43 = vadd.bf16 0, %v429_v40 }
  0xd2   : > { %vm452_vm5 = vcmp.eq.s32.totalorder %v416_v34, %v450_v35  ;;  %vm451_vm6 = vcmp.eq.s32.totalorder %v416_v34, %v447_v36 }
  0xd3   : > { %v2624_v46 = vsel %vm452_vm5, 1.0, %v3479_v2  ;;  %v2623_v47 = vsel %vm451_vm6, 1.0, %v3479_v2  ;;  %v444_v52 = vadd.bf16 %v443_v48, %v430_v43 }
  0xd4   : > { %v457_v53 = vpack.c.bf16 %v2624_v46, %v2623_v47 }
  0xd6   : > { %v461_v39 = vpop.permute.xlu1 %460  ;;  %v464_v41 = vpop.permute.xlu0 %463  ;;  %v458_v58 = vadd.bf16 %v457_v53, %v444_v52 }
  0xd7   : > { %vm465_vm7 = vcmp.eq.s32.totalorder %v416_v34, %v461_v39  ;;  %vm466_vm8 = vcmp.eq.s32.totalorder %v416_v34, %v464_v41  ;;  %v3711_v41 = vld [vmem:[%s405_s26 + $0x8] sm:$0xff]  ;;  %s2618_s26 = sshll.u32 %s3936_s12, 3 }
  0xd8   : > { %v2625_v49 = vsel %vm465_vm7, 1.0, %v3479_v2  ;;  %v2626_v50 = vsel %vm466_vm8, 1.0, %v3479_v2  ;;  %vm904_vm1 = vcmp.gt.f32.partialorder %v3711_v41, 0.5  ;;  %s409_s10 = scalar_lea.vmem %s3932_s9, %s2618_s26 }
  0xd9   : > { %v471_v55 = vpack.c.bf16 %v2626_v50, %v2625_v49 }
  0xdb   : > { %v475_v44 = vpop.permute.xlu1 %474  ;;  %v489_v51 = vpop.permute.xlu0 %488  ;;  %v472_v62 = vadd.bf16 %v471_v55, %v458_v58 }
  0xdc   : > { %vm479_vm9 = vcmp.eq.s32.totalorder %v416_v34, %v475_v44  ;;  %vm493_vm11 = vcmp.eq.s32.totalorder %v416_v34, %v489_v51 }
  0xdd   : > { %v2627_v57 = vsel %vm479_vm9, 1.0, %v3479_v2  ;;  %v2629_v61 = vsel %vm493_vm11, 1.0, %v3479_v2 }
  0xdf   : > { %v478_v54 = vpop.permute.xlu1 %477 }
  0xe0   : > { %vm480_vm10 = vcmp.eq.s32.totalorder %v416_v34, %v478_v54 }
  0xe1   : > { %v2628_v56 = vsel %vm480_vm10, 1.0, %v3479_v2 }
  0xe2   : > { %v485_v59 = vpack.c.bf16 %v2628_v56, %v2627_v57 }
  0xe4   : > { %v492_v60 = vpop.permute.xlu1 %491  ;;  %v486_v0 = vadd.bf16 %v485_v59, %v472_v62 }
  0xe5   : > { %vm494_vm12 = vcmp.eq.s32.totalorder %v416_v34, %v492_v60 }
  0xe6   : > { %v2630_v63 = vsel %vm494_vm12, 1.0, %v3479_v2 }
  0xe7   : > { %v499_v3 = vpack.c.bf16 %v2630_v63, %v2629_v61 }
  0xe9   : > { %v500_v5 = vadd.bf16 %v499_v3, %v486_v0 }
  0xeb   : > { %2922 = vmatmul.mubr.bf16.vlgmr.msra.gmra.mxu0 %v500_v5 }
  0xec   : > { %2926 = vmatpush3.bf16.msra.mxu0 %v3132_v4  ;;  %2941 = vmatprep.mubr.msk.bf16.mxu0 %vm3484_vm0, %v3479_v2 }
  0xed   : > { %2927 = vmatprep.subr.bf16.mxu0 %v3479_v2 }
  0xf0   : > { %2928 = vmatpush3.bf16.msra.mxu0 %v3136_v6 }
  0xf1   : > { %2929 = vmatprep.subr.bf16.mxu0 %v3479_v2 }
  0xf4   : > { %2930 = vmatpush3.bf16.msra.mxu0 %v3140_v7 }
  0xf5   : > { %2931 = vmatprep.subr.bf16.mxu0 %v3479_v2 }
  0xf8   : > { %2932 = vmatpush3.bf16.msra.mxu0 %v3144_v8  ;;  %v3161_v8 = vld [vmem:[%s3928_s5 + $0x38] sm:$0xff]  }
  0xf9   : > { %2933 = vmatprep.subr.bf16.mxu0 %v3479_v2 }
  0xfc   : > { %2934 = vmatpush3.bf16.msra.mxu0 %v3148_v9 }
  0xfd   : > { %2935 = vmatprep.subr.bf16.mxu0 %v3479_v2 }
 0x100   : > { %2936 = vmatpush3.bf16.msra.mxu0 %v3152_v10  ;;  %v3162_v10 = vld [vmem:[%s3928_s5 + $0x30] sm:$0xff]  }
 0x101   : > { %2937 = vmatprep.subr.bf16.mxu0 %v3479_v2 }
 0x104   : > { %2938 = vmatpush3.bf16.msra.mxu0 %v3156_v13  ;;  %v3165_v13 = vld [vmem:[%s3928_s5 + $0x18] sm:$0xff]  }
 0x105   : > { %2939 = vmatprep.subr.bf16.mxu0 %v3479_v2 }
 0x108   : > { %2940 = vmatpush3.bf16.msra.mxu0 %v3160_v16  ;;  %v3168_v16 = vld [vmem:[%s3928_s5] sm:$0xff]  }
 0x1ab   : > { %v599_v17 = vpop.f32.mrf.mxu0 }
 0x1ac   : > { %v3689_v21 = vadd.f32 %v599_v17, %v411_v18 }
 0x1ad   : > { %v2923_v19 = vpop.f32.mrf.mxu0 }
 0x1af   : > { %v602_v20 = vpop.f32.mrf.mxu0 }
 0x1b0   : > { %v3691_v22 = vadd.f32 %v602_v20, %v411_v18 }
 0x1b1   : > { %v2924_v23 = vpop.f32.mrf.mxu0 }
 0x1b2   : > { %v647_v24 = vpack.c.bf16 %v3691_v22, %v3689_v21 }
 0x1b4   : > { %809 = vmatmul.mubr.bf16.vlgmr.msra.gmra.mxu1 %v647_v24  ;;  %2942 = vmatmul.mubr.bf16.vlgmr.msra.gmra.mxu0 %v647_v24 }
 0x1b5   : > { %2947 = vmatprep.mubr.msk.bf16.mxu1 %vm3484_vm0, %v3479_v2  ;;  %1259 = vmatprep.mubr.bf16.mxu0 %v3478_v1 }
 0x274   : > { %v810_v25 = vpop.f32.mrf.mxu1  ;;  %v852_v26 = vpop.f32.mrf.mxu0 }
 0x275   : > { %v935_v35 = vpack.c.bf16 %v852_v26, %v852_v26 }
 0x276   : > { %v812_v27 = vpop.f32.mrf.mxu1  ;;  %v2943_v28 = vpop.f32.mrf.mxu0 }
 0x277   : > { %v859_v29 = vpack.c.bf16 %v812_v27, %v812_v27  ;;  %v941_v37 = vsel %vm939_vm13, %v935_v35, 0 }
 0x278   : > { %v814_v30 = vpop.f32.mrf.mxu1  ;;  %v855_v32 = vpop.f32.mrf.mxu0 }
 0x279   : > { %2946 = vmatpush3.bf16.xpose.msra.mxu1 %v859_v29  ;;  %v858_v36 = vpack.c.bf16 %v814_v30, %v810_v25  ;;  %v3169_v30 = vld [vmem:[#allocation4 + $0x70] ss:$8 sps:$4 sm:$0xff]   ;;  %v3171_v32 = vld [vmem:[#allocation4 + $0x74] ss:$8 sps:$4 sm:$0xff]  }
 0x27a   : > { %v816_v33 = vpop.f32.mrf.mxu1  ;;  %v2944_v34 = vpop.f32.mrf.mxu0  ;;  %2951 = vmatprep.subr.bf16.mxu1 %v3479_v2  ;;  %1227 = vmatprep.subr.bf16.mxu0 %v3171_v32 }
 0x27b   : > { %1228 = vmatpush1.bf16.msra.mxu0 %v3169_v30  ;;  %v2639_v30 = vld [vmem:[%s3926_s3 + $0x4] ss:$8 sm:$0x3] }
 0x280   : > { %2948 = vmatmul.mubr.bf16.vlgmr.msra.gmra.mxu1 %v858_v36 }
 0x281   : > { %2952 = vmatpush3.bf16.msra.mxu1 %v941_v37  ;;  %2953 = vmatprep.mubr.msk.bf16.mxu1 %vm3484_vm0, %v3479_v2 }
 0x282   : > { %2957 = vmatprep.subr.bf16.mxu1 %v3479_v2 }
 0x340   : > { %v894_v39 = vpop.f32.mrf.mxu1 }
 0x341   : > { %v901_v40 = vmul.f32 0.088388346, %v894_v39 }
 0x342   : > { %v2949_v42 = vpop.f32.mrf.mxu1 }
 0x343   : > { %v905_v43 = vsel %vm903_vm14, %v901_v40, -1e+30  ;;  %v3174_v42 = vld [vmem:[#allocation4 + $0x64] ss:$8 sps:$4 sm:$0xff]  }
 0x344   : > { %v897_v44 = vpop.f32.mrf.mxu1  ;;  %v908_v45 = vsel %vm907_vm15, %v905_v43, -inf  ;;  %1229 = vmatprep.subr.bf16.mxu0 %v3174_v42 }
 0x345   : > { %v902_v46 = vmul.f32 0.088388346, %v897_v44  ;;  %909 = vmax.xlane.f32.xlu1 %v908_v45  ;;  %v3175_v44 = vld [vmem:[#allocation4 + $0x50] ss:$8 sps:$4 sm:$0xff]   ;;  %v3178_v45 = vld [vmem:[#allocation4 + $0x40] ss:$8 sps:$4 sm:$0xff]  }
 0x346   : > { %v2950_v47 = vpop.f32.mrf.mxu1 }
 0x347   : > { %v906_v48 = vsel %vm904_vm1, %v902_v46, -1e+30  ;;  %v3180_v46 = vld [vmem:[#allocation4 + $0x44] ss:$8 sps:$4 sm:$0xff]   ;;  %v3183_v47 = vld [vmem:[#allocation4 + $0x34] ss:$8 sps:$4 sm:$0xff]  }
 0x348   : > { %v911_v49 = vsel %vm907_vm15, %v906_v48, -inf }
 0x349   : > { %912 = vmax.xlane.f32.xlu0 %v911_v49  ;;  %v3186_v49 = vld [vmem:[#allocation4 + $0x24] ss:$8 sps:$4 sm:$0xff]  }
 0x3ce   : > { %v910_v50 = vpop.xlane.xlu1 %909 }
 0x3cf   : > { %v914_v51 = vsub.f32 %v905_v43, %v910_v50  ;;  %v3172_v43 = vld [vmem:[#allocation4 + $0x60] ss:$8 sps:$4 sm:$0xff]  }
 0x3d0   : > { %1230 = vmatpush1.bf16.msra.mxu0 %v3172_v43  ;;  %v3184_v50 = vld [vmem:[#allocation4 + $0x20] ss:$8 sps:$4 sm:$0xff]  }
 0x3d1   : > { %v916_v52 = vmul.f32 1.442695, %v914_v51  ;;  %v3189_v51 = vld [vmem:[#allocation4 + $0x14] ss:$8 sps:$4 sm:$0xff]  }
 0x3d2   : > { %v913_v53 = vpop.xlane.xlu0 %912 }
 0x3d3   : > { %3297 = vpow2.f32 %v916_v52  ;;  %v915_v54 = vsub.f32 %v906_v48, %v913_v53  ;;  %v3181_v48 = vld [vmem:[#allocation4 + $0x30] ss:$8 sps:$4 sm:$0xff]   ;;  %v3192_v53 = vld [vmem:[#allocation4 + $0x4] ss:$8 sps:$4 sm:$0xff]  }
 0x3d4   : > { %v3187_v52 = vld [vmem:[#allocation4 + $0x10] ss:$8 sps:$4 sm:$0xff]  }
 0x3d5   : > { %v918_v55 = vmul.f32 1.442695, %v915_v54  ;;  %v3190_v54 = vld [vmem:[#allocation4] ss:$8 sps:$4 sm:$0xff]  }
 0x3d7   : > { %3299 = vpow2.f32 %v918_v55 }
 0x3e0   : > { %v3298_v56 = vpop.eup %3297 }
 0x3e1   : > { %v920_v57 = vmul.f32 %v3298_v56, %v3708_v38 }
 0x3e3   : > { %v922_v58 = vsel %vm907_vm15, %v920_v57, 0.0 }
 0x3e4   : > { %v3300_v59 = vpop.eup %3299  ;;  %923 = vadd.xlane.f32.xlu0 %v922_v58 }
 0x3e5   : > { %v921_v60 = vmul.f32 %v3300_v59, %v3711_v41 }
 0x3e7   : > { %v925_v61 = vsel %vm907_vm15, %v921_v60, 0.0 }
 0x3e8   : > { %926 = vadd.xlane.f32.xlu1 %v925_v61 }
 0x46d   : > { %v924_v62 = vpop.xlane.xlu0 %923 }
 0x46e   : > { %v928_v63 = vadd.f32 1e-30, %v924_v62 }
 0x470   : > { %3301 = vrcp.f32 %v928_v63  ;;  %v608_v63 = vld [vmem:[%s3926_s3 + $0x2] ss:$0 sm:$0xff] }
 0x471   : > { %v927_v0 = vpop.xlane.xlu1 %926 }
 0x472   : > { %v929_v3 = vadd.f32 1e-30, %v927_v0 }
 0x474   : > { %3303 = vrcp.f32 %v929_v3 }
 0x47d   : > { %v3302_v4 = vpop.eup %3301 }
 0x47e   : > { %v932_v6 = vmul.f32 %v3302_v4, %v920_v57 }
 0x481   : > { %v3304_v5 = vpop.eup %3303 }
 0x482   : > { %v933_v7 = vmul.f32 %v3304_v5, %v921_v60  ;;  %v609_v5 = vld [vmem:[%s3926_s3 + $0x3] ss:$0 sm:$0xff] }
 0x484   : > { %v934_v9 = vpack.c.bf16 %v933_v7, %v932_v6 }
 0x486   : > { %2954 = vmatmul.mubr.msk.bf16.vlgmr.msra.gmra.mxu1 %vm907_vm15, %v934_v9 }
 0x487   : > { %2958 = vmatpush3.bf16.msra.mxu1 %v3161_v8  ;;  %2973 = vmatprep.mubr.msk.bf16.mxu1 %vm3484_vm0, %v3479_v2 }
 0x488   : > { %2959 = vmatprep.subr.bf16.mxu1 %v3479_v2 }
 0x48b   : > { %2960 = vmatpush3.bf16.msra.mxu1 %v3162_v10  ;;  %v3193_v10 = vld [vmem:[#allocation6 + $0x78] sm:$0xff]  }
 0x48c   : > { %2961 = vmatprep.subr.bf16.mxu1 %v3479_v2 }
 0x48f   : > { %2962 = vmatpush3.bf16.msra.mxu1 %v3163_v11  ;;  %v3194_v11 = vld [vmem:[#allocation6 + $0x38] sm:$0xff]  }
 0x490   : > { %2963 = vmatprep.subr.bf16.mxu1 %v3479_v2 }
 0x493   : > { %2964 = vmatpush3.bf16.msra.mxu1 %v3164_v12  ;;  %v3195_v12 = vld [vmem:[#allocation6 + $0x70] sm:$0xff]  }
 0x494   : > { %2965 = vmatprep.subr.bf16.mxu1 %v3479_v2 }
 0x497   : > { %2966 = vmatpush3.bf16.msra.mxu1 %v3165_v13  ;;  %v3196_v13 = vld [vmem:[#allocation6 + $0x30] sm:$0xff]  }
 0x498   : > { %2967 = vmatprep.subr.bf16.mxu1 %v3479_v2 }
 0x49b   : > { %2968 = vmatpush3.bf16.msra.mxu1 %v3166_v14  ;;  %v3197_v14 = vld [vmem:[#allocation6 + $0x68] sm:$0xff]  }
 0x49c   : > { %2969 = vmatprep.subr.bf16.mxu1 %v3479_v2 }
 0x49f   : > { %2970 = vmatpush3.bf16.msra.mxu1 %v3167_v15  ;;  %v3198_v15 = vld [vmem:[#allocation6 + $0x28] sm:$0xff]  }
 0x4a0   : > { %2971 = vmatprep.subr.bf16.mxu1 %v3479_v2 }
 0x4a3   : > { %2972 = vmatpush3.bf16.msra.mxu1 %v3168_v16  ;;  %v3199_v16 = vld [vmem:[#allocation6 + $0x60] sm:$0xff]  }
 0x4a4   : > { %2830 = vmatprep.subr.bf16.mxu1 %v3193_v10 }
 0x546   : > { %v977_v17 = vpop.f32.mrf.mxu1 }
 0x548   : > { %v2955_v18 = vpop.f32.mrf.mxu1 }
 0x549   : > { %v3201_v18 = vld [vmem:[#allocation6 + $0x58] sm:$0xff]  }
 0x54a   : > { %v980_v19 = vpop.f32.mrf.mxu1 }
 0x54b   : > { %v1000_v20 = vpack.c.bf16 %v980_v19, %v977_v17  ;;  %v3200_v17 = vld [vmem:[#allocation6 + $0x20] sm:$0xff]   ;;  %v3202_v19 = vld [vmem:[#allocation6 + $0x18] sm:$0xff]  }
 0x54c   : > { %v2956_v23 = vpop.f32.mrf.mxu1 }
 0x54d   : > { %2974 = vmatmul.mubr.bf16.vlgmr.msra.gmra.mxu1 %v1000_v20  ;;  %v3203_v20 = vld [vmem:[#allocation6 + $0x50] sm:$0xff]  }
 0x54e   : > { %2831 = vmatpush3.bf16.msra.mxu1 %v3194_v11  ;;  %v3204_v23 = vld [vmem:[#allocation6 + $0x10] sm:$0xff]  }
 0x54f   : > { %2832 = vmatprep.subr.bf16.mxu1 %v3195_v12 }
 0x552   : > { %2833 = vmatpush3.bf16.msra.mxu1 %v3196_v13 }
 0x553   : > { %2834 = vmatprep.subr.bf16.mxu1 %v3197_v14 }
 0x556   : > { %2835 = vmatpush3.bf16.msra.mxu1 %v3198_v15 }
 0x557   : > { %2836 = vmatprep.subr.bf16.mxu1 %v3199_v16 }
 0x55a   : > { %2837 = vmatpush3.bf16.msra.mxu1 %v3200_v17 }
 0x55b   : > { %2838 = vmatprep.subr.bf16.mxu1 %v3201_v18 }
 0x55e   : > { %2839 = vmatpush3.bf16.msra.mxu1 %v3202_v19 }
 0x55f   : > { %2840 = vmatprep.subr.bf16.mxu1 %v3203_v20 }
 0x562   : > { %2841 = vmatpush3.bf16.msra.mxu1 %v3204_v23 }
 0x60d   : > { %v1083_v24 = vpop.f32.mrf.mxu1 }
 0x60e   : > { %v1090_v25 = vadd.f32 %v1083_v24, %v3689_v21  ;;  %v3205_v24 = vld [vmem:[#allocation6 + $0x48] sm:$0xff]  }
 0x60f   : > { %v2975_v26 = vpop.f32.mrf.mxu1  ;;  %2842 = vmatprep.subr.bf16.mxu1 %v3205_v24 }
 0x610   : > { %1092 = vadd.xlane.f32.xlu0 %v1090_v25  ;;  %v3207_v26 = vld [vmem:[#allocation6 + $0x40] sm:$0xff]  }
 0x611   : > { %v1086_v27 = vpop.f32.mrf.mxu1 }
 0x612   : > { %v1091_v28 = vadd.f32 %v1086_v27, %v3691_v22  ;;  %v3177_v22 = vld [vmem:[#allocation4 + $0x54] ss:$8 sps:$4 sm:$0xff]   ;;  %v3208_v27 = vld [vmem:[#allocation6] sm:$0xff]  }
 0x613   : > { %v2976_v29 = vpop.f32.mrf.mxu1  ;;  %1231 = vmatprep.subr.bf16.mxu0 %v3177_v22 }
 0x614   : > { %1094 = vadd.xlane.f32.xlu1 %v1091_v28  ;;  %1232 = vmatpush1.bf16.msra.mxu0 %v3175_v44 }
 0x615   : > { %1233 = vmatprep.subr.bf16.mxu0 %v3180_v46 }
 0x618   : > { %1234 = vmatpush1.bf16.msra.mxu0 %v3178_v45 }
 0x619   : > { %1235 = vmatprep.subr.bf16.mxu0 %v3183_v47 }
 0x61c   : > { %1236 = vmatpush1.bf16.msra.mxu0 %v3181_v48 }
 0x61d   : > { %1237 = vmatprep.subr.bf16.mxu0 %v3186_v49 }
 0x620   : > { %1238 = vmatpush1.bf16.msra.mxu0 %v3184_v50 }
 0x621   : > { %1239 = vmatprep.subr.bf16.mxu0 %v3189_v51 }
 0x624   : > { %1240 = vmatpush1.bf16.msra.mxu0 %v3187_v52 }
 0x625   : > { %1241 = vmatprep.subr.bf16.mxu0 %v3192_v53 }
 0x628   : > { %1242 = vmatpush1.bf16.msra.mxu0 %v3190_v54 }
 0x699   : > { %v1093_v33 = vpop.xlane.xlu0 %1092 }
 0x69a   : > { %v1097_v34 = vmul.f32 0.0078125, %v1093_v33 }
 0x69c   : > { %v1099_v35 = vsub.f32 %v1090_v25, %v1097_v34  ;;  %v3206_v25 = vld [vmem:[#allocation6 + $0x8] sm:$0xff]  }
 0x69d   : > { %v1095_v36 = vpop.xlane.xlu1 %1094  ;;  %2843 = vmatpush3.bf16.msra.mxu1 %v3206_v25 }
 0x69e   : > { %v1098_v37 = vmul.f32 0.0078125, %v1095_v36  ;;  %v1101_v39 = vmul.f32 %v1099_v35, %v1099_v35  ;;  %2844 = vmatprep.subr.bf16.mxu1 %v3207_v26  ;;  %v612_v26 = vld [vmem:[%s3926_s3 + $0x5] ss:$0 sm:$0xff] }
 0x6a0   : > { %v1100_v40 = vsub.f32 %v1091_v28, %v1098_v37  ;;  %1103 = vadd.xlane.f32.xlu0 %v1101_v39  ;;  %v3775_v28 = vshrl.u32 %v415_v31, 7 }
 0x6a1   : > { %2845 = vmatpush3.bf16.msra.mxu1 %v3208_v27 }
 0x6a2   : > { %v1102_v21 = vmul.f32 %v1100_v40, %v1100_v40  ;;  %2977 = vmatprep.subr.bf16.mxu1 %v3479_v2  ;;  %v1139_v29 = vsub.s32 0, %v3775_v28  ;;  %v1143_v32 = vsub.s32 1, %v3775_v28 }
 0x6a4   : > { %1105 = vadd.xlane.f32.xlu1 %v1102_v21  ;;  %v1140_v33 = vrot.slane %v2639_v30, %v1139_v29  ;;  %v1144_v34 = vrot.slane %v2639_v30, %v1143_v32 }
 0x729   : > { %v1104_v55 = vpop.xlane.xlu0 %1103 }
 0x72a   : > { %v1107_v56 = vmul.f32 0.0078125, %v1104_v55 }
 0x72c   : > { %v1109_v57 = vadd.f32 1e-12, %v1107_v56 }
 0x72d   : > { %v1106_v58 = vpop.xlane.xlu1 %1105 }
 0x72e   : > { %3305 = vrsqrt.f32 %v1109_v57  ;;  %v1108_v59 = vmul.f32 0.0078125, %v1106_v58 }
 0x730   : > { %v1110_v60 = vadd.f32 1e-12, %v1108_v59 }
 0x732   : > { %3307 = vrsqrt.f32 %v1110_v60 }
 0x73b   : > { %v3306_v61 = vpop.eup %3305 }
 0x73c   : > { %v1113_v62 = vmul.f32 %v3306_v61, %v1099_v35 }
 0x73e   : > { %v1115_v4 = vmul.f32 %v1113_v62, %v608_v63 }
 0x73f   : > { %v3308_v0 = vpop.eup %3307 }
 0x740   : > { %v1114_v3 = vmul.f32 %v3308_v0, %v1100_v40  ;;  %v3766_v7 = vadd.f32 %v1115_v4, %v609_v5 }
 0x742   : > { %v1116_v6 = vmul.f32 %v1114_v3, %v608_v63 }
 0x744   : > { %v3768_v8 = vadd.f32 %v1116_v6, %v609_v5 }
 0x746   : > { %v1135_v9 = vpack.c.bf16 %v3768_v8, %v3766_v7 }
 0x748   : > { %1260 = vmatmul.mubr.bf16.vlgmr.msra.gmra.mxu0 %v1135_v9 }
 0x749   : > { %1708 = vmatprep.mubr.bf16.mxu0 %v3478_v1 }
 0x808   : > { %v1261_v35 = vpop.f32.mrf.mxu0 }
 0x809   : > { %v1262_v36 = vadd.f32 %v1261_v35, %v1140_v33 }
 0x80a   : > { %v1263_v37 = vpop.f32.mrf.mxu0 }
 0x80b   : > { %v1270_v39 = vmul.f32 %v1262_v36, %v1262_v36  ;;  %v1264_v31 = vadd.f32 %v1263_v37, %v1144_v34  ;;  %v3209_v37 = vld [vmem:[#allocation2 + $0x168] ss:$12 sps:$4 sm:$0xff]  }
 0x80c   : > { %v1265_v40 = vpop.f32.mrf.mxu0 }
 0x80d   : > { %v1274_v21 = vmul.f32 %v1270_v39, %v1262_v36  ;;  %v1271_v42 = vmul.f32 %v1264_v31, %v1264_v31  ;;  %v1266_v43 = vadd.f32 %v1265_v40, %v1140_v33  ;;  %v3211_v39 = vld [vmem:[#allocation2 + $0x16c] ss:$12 sps:$4 sm:$0xff]  }
 0x80e   : > { %v1267_v22 = vpop.f32.mrf.mxu0  ;;  %1676 = vmatprep.subr.bf16.mxu0 %v3211_v39 }
 0x80f   : > { %v1278_v44 = vmul.f32 0.044715, %v1274_v21  ;;  %v1275_v45 = vmul.f32 %v1271_v42, %v1264_v31  ;;  %v1272_v46 = vmul.f32 %v1266_v43, %v1266_v43  ;;  %v1268_v47 = vadd.f32 %v1267_v22, %v1144_v34  ;;  %1677 = vmatpush1.bf16.msra.mxu0 %v3209_v37 }
 0x811   : > { %v1282_v48 = vadd.f32 %v1278_v44, %v1262_v36  ;;  %v1279_v49 = vmul.f32 0.044715, %v1275_v45  ;;  %v1276_v50 = vmul.f32 %v1272_v46, %v1266_v43  ;;  %v1273_v51 = vmul.f32 %v1268_v47, %v1268_v47  ;;  %v3215_v45 = vld [vmem:[#allocation2 + $0x154] ss:$12 sps:$4 sm:$0xff]   ;;  %v3213_v46 = vld [vmem:[#allocation2 + $0x150] ss:$12 sps:$4 sm:$0xff]  }
 0x812   : > { %1678 = vmatprep.subr.bf16.mxu0 %v3215_v45 }
 0x813   : > { %v1286_v52 = vmul.f32 0.7978846, %v1282_v48  ;;  %v1283_v53 = vadd.f32 %v1279_v49, %v1264_v31  ;;  %v1280_v54 = vmul.f32 0.044715, %v1276_v50  ;;  %v1277_v55 = vmul.f32 %v1273_v51, %v1268_v47  ;;  %1679 = vmatpush1.bf16.msra.mxu0 %v3213_v46  ;;  %v3219_v48 = vld [vmem:[#allocation2 + $0x13c] ss:$12 sps:$4 sm:$0xff]  }
 0x814   : > { %v3217_v49 = vld [vmem:[#allocation2 + $0x138] ss:$12 sps:$4 sm:$0xff]   ;;  %v3220_v50 = vld [vmem:[#allocation2 + $0x140] ss:$12 sps:$4 sm:$0xff]   ;;  %1680 = vmatprep.subr.bf16.mxu0 %v3219_v48 }
 0x815   : > { %v1287_v56 = vmul.f32 0.7978846, %v1283_v53  ;;  %v1284_v57 = vadd.f32 %v1280_v54, %v1266_v43  ;;  %v1281_v58 = vmul.f32 0.044715, %v1277_v55  ;;  %3309 = vtanh.f32 %v1286_v52  ;;  %v3221_v51 = vld [vmem:[#allocation2 + $0x120] ss:$12 sps:$4 sm:$0xff]  }
 0x816   : > { %v3223_v52 = vld [vmem:[#allocation2 + $0x124] ss:$12 sps:$4 sm:$0xff]   ;;  %v3224_v53 = vld [vmem:[#allocation2 + $0x128] ss:$12 sps:$4 sm:$0xff]   ;;  %v3227_v54 = vld [vmem:[#allocation2 + $0x10c] ss:$12 sps:$4 sm:$0xff]  }
 0x817   : > { %3311 = vtanh.f32 %v1287_v56  ;;  %v1288_v59 = vmul.f32 0.7978846, %v1284_v57  ;;  %v1285_v60 = vadd.f32 %v1281_v58, %v1268_v47  ;;  %1681 = vmatpush1.bf16.msra.mxu0 %v3217_v49  ;;  %v3225_v55 = vld [vmem:[#allocation2 + $0x108] ss:$12 sps:$4 sm:$0xff]   ;;  %v3228_v56 = vld [vmem:[#allocation2 + $0x110] ss:$12 sps:$4 sm:$0xff]  }
 0x818   : > { %1682 = vmatprep.subr.bf16.mxu0 %v3223_v52  ;;  %v3231_v57 = vld [vmem:[#allocation2 + $0xf4] ss:$12 sps:$4 sm:$0xff]   ;;  %v3229_v58 = vld [vmem:[#allocation2 + $0xf0] ss:$12 sps:$4 sm:$0xff]  }
 0x819   : > { %3313 = vtanh.f32 %v1288_v59  ;;  %v1289_v61 = vmul.f32 0.7978846, %v1285_v60  ;;  %v3232_v59 = vld [vmem:[#allocation2 + $0xf8] ss:$12 sps:$4 sm:$0xff]   ;;  %v3235_v60 = vld [vmem:[#allocation2 + $0xdc] ss:$12 sps:$4 sm:$0xff]  }
 0x81b   : > { %3315 = vtanh.f32 %v1289_v61  ;;  %1683 = vmatpush1.bf16.msra.mxu0 %v3221_v51  ;;  %v3233_v61 = vld [vmem:[#allocation2 + $0xd8] ss:$12 sps:$4 sm:$0xff]  }
 0x81c   : > { %1684 = vmatprep.subr.bf16.mxu0 %v3227_v54 }
 0x81f   : > { %1685 = vmatpush1.bf16.msra.mxu0 %v3225_v55 }
 0x820   : > { %1686 = vmatprep.subr.bf16.mxu0 %v3231_v57 }
 0x822   : > { %v3310_v62 = vpop.eup %3309 }
 0x823   : > { %v1294_v4 = vadd.f32 1.0, %v3310_v62  ;;  %1687 = vmatpush1.bf16.msra.mxu0 %v3229_v58  ;;  %v3236_v62 = vld [vmem:[#allocation2 + $0xe0] ss:$12 sps:$4 sm:$0xff]  }
 0x824   : > { %v3312_v63 = vpop.eup %3311  ;;  %1688 = vmatprep.subr.bf16.mxu0 %v3235_v60 }
 0x825   : > { %v1295_v0 = vadd.f32 1.0, %v3312_v63  ;;  %v1298_v12 = vmul.f32 0.5, %v1294_v4  ;;  %v3239_v63 = vld [vmem:[#allocation2 + $0xc4] ss:$12 sps:$4 sm:$0xff]  }
 0x826   : > { %v3314_v3 = vpop.eup %3313 }
 0x827   : > { %v1296_v5 = vadd.f32 1.0, %v3314_v3  ;;  %v1299_v11 = vmul.f32 0.5, %v1295_v0  ;;  %v1302_v17 = vmul.f32 %v1298_v12, %v1262_v36  ;;  %1689 = vmatpush1.bf16.msra.mxu0 %v3233_v61  ;;  %v3237_v0 = vld [vmem:[#allocation2 + $0xc0] ss:$12 sps:$4 sm:$0xff]   ;;  %v3240_v3 = vld [vmem:[#allocation2 + $0xc8] ss:$12 sps:$4 sm:$0xff]  }
 0x828   : > { %v3316_v6 = vpop.eup %3315  ;;  %1690 = vmatprep.subr.bf16.mxu0 %v3239_v63 }
 0x829   : > { %v1300_v9 = vmul.f32 0.5, %v1296_v5  ;;  %v1297_v10 = vadd.f32 1.0, %v3316_v6  ;;  %v1303_v15 = vmul.f32 %v1299_v11, %v1264_v31  ;;  %v3212_v31 = vld [vmem:[#allocation2 + $0x170] ss:$12 sps:$4 sm:$0xff]  }
 0x82b   : > { %v1301_v13 = vmul.f32 0.5, %v1297_v10  ;;  %v1304_v14 = vmul.f32 %v1300_v9, %v1266_v43  ;;  %1691 = vmatpush1.bf16.msra.mxu0 %v3237_v0 }
 0x82c   : > { %2997 = vmatprep.subr.bf16.mxu0 %v3479_v2 }
 0x82d   : > { %v1305_v16 = vmul.f32 %v1301_v13, %v1268_v47  ;;  %v1338_v19 = vpack.c.bf16 %v1304_v14, %v1302_v17  ;;  %v3216_v47 = vld [vmem:[#allocation2 + $0x158] ss:$12 sps:$4 sm:$0xff]  }
 0x82e   : > { %v613_v14 = vld [vmem:[%s3926_s3 + $0x6] ss:$0 sm:$0xff] }
 0x82f   : > { %v1339_v18 = vpack.c.bf16 %v1305_v16, %v1303_v15 }
 0x831   : > { %1468 = vmatprep.mubr.bf16.mxu1 %v1339_v18  ;;  %v614_v18 = vld [vmem:[%s3926_s3 + $0x7] ss:$0 sm:$0xff] }
 0x832   : > { %1469 = vmatmul.mubr.bf16.vlgmr.msra.gmra.mxu1 %v1338_v19 }
 0x833   : > { %2993 = vmatprep.mubr.msk.bf16.mxu1 %vm3484_vm0, %v3479_v2  ;;  %2978 = vmatpush3.bf16.msra.mxu1 %v3212_v31 }
 0x834   : > { %2979 = vmatprep.subr.bf16.mxu1 %v3479_v2 }
 0x837   : > { %2980 = vmatpush3.bf16.msra.mxu1 %v3216_v47 }
 0x838   : > { %2981 = vmatprep.subr.bf16.mxu1 %v3479_v2 }
 0x83b   : > { %2982 = vmatpush3.bf16.msra.mxu1 %v3220_v50 }
 0x83c   : > { %2983 = vmatprep.subr.bf16.mxu1 %v3479_v2 }
 0x83f   : > { %2984 = vmatpush3.bf16.msra.mxu1 %v3224_v53 }
 0x840   : > { %2985 = vmatprep.subr.bf16.mxu1 %v3479_v2 }
 0x843   : > { %2986 = vmatpush3.bf16.msra.mxu1 %v3228_v56 }
 0x844   : > { %2987 = vmatprep.subr.bf16.mxu1 %v3479_v2 }
 0x847   : > { %2988 = vmatpush3.bf16.msra.mxu1 %v3232_v59 }
 0x848   : > { %2989 = vmatprep.subr.bf16.mxu1 %v3479_v2 }
 0x84b   : > { %2990 = vmatpush3.bf16.msra.mxu1 %v3236_v62 }
 0x84c   : > { %2991 = vmatprep.subr.bf16.mxu1 %v3479_v2 }
 0x84f   : > { %2992 = vmatpush3.bf16.msra.mxu1 %v3240_v3 }
 0x8f2   : > { %v2846_v20 = vpop.f32.mrf.mxu1 }
 0x8f4   : > { %v2847_v23 = vpop.f32.mrf.mxu1 }
 0x8f5   : > { %v2848_v24 = vadd.f32 %v2847_v23, %v2846_v20 }
 0x8f6   : > { %v2849_v25 = vpop.f32.mrf.mxu1 }
 0x8f7   : > { %v1477_v27 = vadd.f32 %v2848_v24, %v3766_v7 }
 0x8f8   : > { %v2850_v30 = vpop.f32.mrf.mxu1 }
 0x8f9   : > { %v2851_v33 = vadd.f32 %v2850_v30, %v2849_v25  ;;  %v1479_v34 = vadd.f32 %v1477_v27, %v612_v26 }
 0x8fb   : > { %v1478_v35 = vadd.f32 %v2851_v33, %v3768_v8  ;;  %1481 = vadd.xlane.f32.xlu0 %v1479_v34 }
 0x8fd   : > { %v1480_v36 = vadd.f32 %v1478_v35, %v612_v26 }
 0x8ff   : > { %1483 = vadd.xlane.f32.xlu1 %v1480_v36 }
 0x984   : > { %v1482_v40 = vpop.xlane.xlu0 %1481 }
 0x985   : > { %v1485_v21 = vmul.f32 0.0078125, %v1482_v40 }
 0x987   : > { %v3794_v42 = vsub.f32 %v1479_v34, %v1485_v21 }
 0x988   : > { %v1484_v7 = vpop.xlane.xlu1 %1483 }
 0x989   : > { %v1486_v43 = vmul.f32 0.0078125, %v1484_v7  ;;  %v1489_v8 = vmul.f32 %v3794_v42, %v3794_v42 }
 0x98b   : > { %v3798_v22 = vsub.f32 %v1480_v36, %v1486_v43  ;;  %1491 = vadd.xlane.f32.xlu0 %v1489_v8 }
 0x98d   : > { %v1490_v44 = vmul.f32 %v3798_v22, %v3798_v22 }
 0x98f   : > { %1493 = vadd.xlane.f32.xlu1 %v1490_v44 }
 0xa14   : > { %v1492_v4 = vpop.xlane.xlu0 %1491 }
 0xa15   : > { %v1495_v5 = vmul.f32 0.0078125, %v1492_v4 }
 0xa17   : > { %v1497_v6 = vadd.f32 1e-12, %v1495_v5 }
 0xa18   : > { %v1494_v9 = vpop.xlane.xlu1 %1493 }
 0xa19   : > { %3317 = vrsqrt.f32 %v1497_v6  ;;  %v1496_v10 = vmul.f32 0.0078125, %v1494_v9  ;;  %v3243_v6 = vld [vmem:[%s3928_s5 + $0x68] sm:$0xff]   ;;  %v3244_v9 = vld [vmem:[%s3928_s5 + $0x60] sm:$0xff]  }
 0xa1b   : > { %v1498_v11 = vadd.f32 1e-12, %v1496_v10  ;;  %v3245_v10 = vld [vmem:[%s3928_s5 + $0x58] sm:$0xff]  }
 0xa1d   : > { %3319 = vrsqrt.f32 %v1498_v11  ;;  %v3246_v11 = vld [vmem:[%s3928_s5 + $0x50] sm:$0xff]  }
 0xa26   : > { %v3318_v12 = vpop.eup %3317 }
 0xa27   : > { %v1501_v13 = vmul.f32 %v3318_v12, %v3794_v42  ;;  %v3247_v12 = vld [vmem:[%s3928_s5 + $0x48] sm:$0xff]  }
 0xa29   : > { %v1503_v17 = vmul.f32 %v1501_v13, %v613_v14  ;;  %v3248_v13 = vld [vmem:[%s3928_s5 + $0x40] sm:$0xff]  }
 0xa2a   : > { %v3320_v15 = vpop.eup %3319 }
 0xa2b   : > { %v1502_v16 = vmul.f32 %v3320_v15, %v3798_v22  ;;  %v3817_v20 = vadd.f32 %v1503_v17, %v614_v18 }
 0xa2d   : > { %v1504_v19 = vmul.f32 %v1502_v16, %v613_v14 }
 0xa2f   : > { %v3819_v23 = vadd.f32 %v1504_v19, %v614_v18 }
 0xa31   : > { %v1547_v24 = vpack.c.bf16 %v3819_v23, %v3817_v20 }
 0xa33   : > { %1709 = vmatmul.mubr.bf16.vlgmr.msra.gmra.mxu0 %v1547_v24  ;;  %2994 = vmatmul.mubr.bf16.vlgmr.msra.gmra.mxu1 %v1547_v24 }
 0xa34   : > { %2999 = vmatprep.mubr.msk.bf16.mxu0 %vm3484_vm0, %v3479_v2  ;;  %2156 = vmatprep.mubr.bf16.mxu1 %v3478_v1 }
 0xaf3   : > { %v1710_v25 = vpop.f32.mrf.mxu0  ;;  %v1752_v26 = vpop.f32.mrf.mxu1 }
 0xaf4   : > { %v1832_v39 = vpack.c.bf16 %v1752_v26, %v1752_v26 }
 0xaf5   : > { %v1712_v27 = vpop.f32.mrf.mxu0  ;;  %v2995_v30 = vpop.f32.mrf.mxu1 }
 0xaf6   : > { %v1759_v33 = vpack.c.bf16 %v1712_v27, %v1712_v27  ;;  %v1837_v40 = vsel %vm939_vm13, %v1832_v39, 0 }
 0xaf7   : > { %v1714_v34 = vpop.f32.mrf.mxu0  ;;  %v1755_v35 = vpop.f32.mrf.mxu1 }
 0xaf8   : > { %2998 = vmatpush3.bf16.xpose.msra.mxu0 %v1759_v33  ;;  %v1758_v31 = vpack.c.bf16 %v1714_v34, %v1710_v25  ;;  %v3249_v33 = vld [vmem:[#allocation4 + $0xf0] ss:$8 sps:$4 sm:$0xff]   ;;  %v3251_v34 = vld [vmem:[#allocation4 + $0xf4] ss:$8 sps:$4 sm:$0xff]  }
 0xaf9   : > { %v1716_v36 = vpop.f32.mrf.mxu0  ;;  %v2996_v37 = vpop.f32.mrf.mxu1  ;;  %3003 = vmatprep.subr.bf16.mxu0 %v3479_v2  ;;  %2124 = vmatprep.subr.bf16.mxu1 %v3251_v34 }
 0xafa   : > { %2125 = vmatpush1.bf16.msra.mxu1 %v3249_v33 }
 0xaff   : > { %3000 = vmatmul.mubr.bf16.vlgmr.msra.gmra.mxu0 %v1758_v31 }
 0xb00   : > { %3004 = vmatpush3.bf16.msra.mxu0 %v1837_v40  ;;  %3005 = vmatprep.mubr.msk.bf16.mxu0 %vm3484_vm0, %v3479_v2 }
 0xb01   : > { %3009 = vmatprep.subr.bf16.mxu0 %v3479_v2 }
 0xbbf   : > { %v1794_v1 = vpop.f32.mrf.mxu0 }
 0xbc0   : > { %v1801_v21 = vmul.f32 0.088388346, %v1794_v1 }
 0xbc1   : > { %v3001_v42 = vpop.f32.mrf.mxu0 }
 0xbc2   : > { %v1803_v7 = vsel %vm903_vm14, %v1801_v21, -1e+30  ;;  %v3254_v21 = vld [vmem:[#allocation4 + $0xe4] ss:$8 sps:$4 sm:$0xff]   ;;  %v3252_v42 = vld [vmem:[#allocation4 + $0xe0] ss:$8 sps:$4 sm:$0xff]  }
 0xbc3   : > { %v1797_v43 = vpop.f32.mrf.mxu0  ;;  %v1805_v8 = vsel %vm907_vm15, %v1803_v7, -inf  ;;  %2126 = vmatprep.subr.bf16.mxu1 %v3254_v21 }
 0xbc4   : > { %v1802_v22 = vmul.f32 0.088388346, %v1797_v43  ;;  %1806 = vmax.xlane.f32.xlu0 %v1805_v8  ;;  %2127 = vmatpush1.bf16.msra.mxu1 %v3252_v42  ;;  %v3258_v43 = vld [vmem:[#allocation4 + $0xc0] ss:$8 sps:$4 sm:$0xff]   ;;  %v3260_v8 = vld [vmem:[#allocation4 + $0xc4] ss:$8 sps:$4 sm:$0xff]  }
 0xbc5   : > { %v3002_v44 = vpop.f32.mrf.mxu0 }
 0xbc6   : > { %v1804_v45 = vsel %vm904_vm1, %v1802_v22, -1e+30  ;;  %v3263_v22 = vld [vmem:[#allocation4 + $0xb4] ss:$8 sps:$4 sm:$0xff]   ;;  %v3261_v44 = vld [vmem:[#allocation4 + $0xb0] ss:$8 sps:$4 sm:$0xff]  }
 0xbc7   : > { %v1808_v46 = vsel %vm907_vm15, %v1804_v45, -inf }
 0xbc8   : > { %1809 = vmax.xlane.f32.xlu1 %v1808_v46  ;;  %v3264_v46 = vld [vmem:[#allocation4 + $0xa0] ss:$8 sps:$4 sm:$0xff]  }
 0xc4d   : > { %v1807_v47 = vpop.xlane.xlu0 %1806 }
 0xc4e   : > { %v1811_v48 = vsub.f32 %v1803_v7, %v1807_v47  ;;  %v3255_v7 = vld [vmem:[#allocation4 + $0xd0] ss:$8 sps:$4 sm:$0xff]   ;;  %v3269_v47 = vld [vmem:[#allocation4 + $0x94] ss:$8 sps:$4 sm:$0xff]  }
 0xc50   : > { %v1813_v49 = vmul.f32 1.442695, %v1811_v48  ;;  %v3267_v48 = vld [vmem:[#allocation4 + $0x90] ss:$8 sps:$4 sm:$0xff]  }
 0xc51   : > { %v1810_v50 = vpop.xlane.xlu1 %1809 }
 0xc52   : > { %3321 = vpow2.f32 %v1813_v49  ;;  %v1812_v51 = vsub.f32 %v1804_v45, %v1810_v50  ;;  %v3266_v45 = vld [vmem:[#allocation4 + $0xa4] ss:$8 sps:$4 sm:$0xff]   ;;  %v3270_v50 = vld [vmem:[#allocation4 + $0x80] ss:$8 sps:$4 sm:$0xff]  }
 0xc53   : > { %v3272_v49 = vld [vmem:[#allocation4 + $0x84] ss:$8 sps:$4 sm:$0xff]  }
 0xc54   : > { %v1815_v52 = vmul.f32 1.442695, %v1812_v51 }
 0xc56   : > { %3323 = vpow2.f32 %v1815_v52 }
 0xc5f   : > { %v3322_v53 = vpop.eup %3321 }
 0xc60   : > { %v1817_v54 = vmul.f32 %v3322_v53, %v3708_v38  ;;  %v3241_v38 = vld [vmem:[%s3928_s5 + $0x78] sm:$0xff]  }
 0xc62   : > { %v1819_v55 = vsel %vm907_vm15, %v1817_v54, 0.0 }
 0xc63   : > { %v3324_v56 = vpop.eup %3323  ;;  %1820 = vadd.xlane.f32.xlu0 %v1819_v55 }
 0xc64   : > { %v1818_v57 = vmul.f32 %v3324_v56, %v3711_v41  ;;  %v3242_v41 = vld [vmem:[%s3928_s5 + $0x70] sm:$0xff]  }
 0xc66   : > { %v1822_v58 = vsel %vm907_vm15, %v1818_v57, 0.0 }
 0xc67   : > { %1823 = vadd.xlane.f32.xlu1 %v1822_v58 }
 0xcec   : > { %v1821_v59 = vpop.xlane.xlu0 %1820 }
 0xced   : > { %v1825_v60 = vadd.f32 1e-30, %v1821_v59  ;;  %v1507_v59 = vld [vmem:[%s3926_s3 + $0x10] ss:$0 sm:$0xff] }
 0xcef   : > { %3325 = vrcp.f32 %v1825_v60 }
 0xcf0   : > { %v1824_v61 = vpop.xlane.xlu1 %1823 }
 0xcf1   : > { %v1826_v62 = vadd.f32 1e-30, %v1824_v61 }
 0xcf3   : > { %3327 = vrcp.f32 %v1826_v62 }
 0xcfc   : > { %v3326_v63 = vpop.eup %3325 }
 0xcfd   : > { %v1829_v3 = vmul.f32 %v3326_v63, %v1817_v54  ;;  %v1508_v63 = vld [vmem:[%s3926_s3 + $0x11] ss:$0 sm:$0xff] }
 0xd00   : > { %v3328_v0 = vpop.eup %3327 }
 0xd01   : > { %v1830_v4 = vmul.f32 %v3328_v0, %v1818_v57 }
 0xd03   : > { %v1831_v5 = vpack.c.bf16 %v1830_v4, %v1829_v3 }
 0xd05   : > { %3006 = vmatmul.mubr.msk.bf16.vlgmr.msra.gmra.mxu0 %vm907_vm15, %v1831_v5  ;;  %v3273_v5 = vld [vmem:[#allocation6 + $0xf8] sm:$0xff]  }
 0xd06   : > { %3010 = vmatpush3.bf16.msra.mxu0 %v3241_v38  ;;  %3025 = vmatprep.mubr.msk.bf16.mxu0 %vm3484_vm0, %v3479_v2 }
 0xd07   : > { %3011 = vmatprep.subr.bf16.mxu0 %v3479_v2 }
 0xd0a   : > { %3012 = vmatpush3.bf16.msra.mxu0 %v3242_v41  ;;  %v3274_v41 = vld [vmem:[#allocation6 + $0xb8] sm:$0xff]  }
 0xd0b   : > { %3013 = vmatprep.subr.bf16.mxu0 %v3479_v2 }
 0xd0e   : > { %3014 = vmatpush3.bf16.msra.mxu0 %v3243_v6  ;;  %v3275_v6 = vld [vmem:[#allocation6 + $0xf0] sm:$0xff]  }
 0xd0f   : > { %3015 = vmatprep.subr.bf16.mxu0 %v3479_v2 }
 0xd12   : > { %3016 = vmatpush3.bf16.msra.mxu0 %v3244_v9  ;;  %v3276_v9 = vld [vmem:[#allocation6 + $0xb0] sm:$0xff]  }
 0xd13   : > { %3017 = vmatprep.subr.bf16.mxu0 %v3479_v2 }
 0xd16   : > { %3018 = vmatpush3.bf16.msra.mxu0 %v3245_v10  ;;  %v3277_v10 = vld [vmem:[#allocation6 + $0xe8] sm:$0xff]  }
 0xd17   : > { %3019 = vmatprep.subr.bf16.mxu0 %v3479_v2 }
 0xd1a   : > { %3020 = vmatpush3.bf16.msra.mxu0 %v3246_v11  ;;  %v3278_v11 = vld [vmem:[#allocation6 + $0xa8] sm:$0xff]  }
 0xd1b   : > { %3021 = vmatprep.subr.bf16.mxu0 %v3479_v2 }
 0xd1e   : > { %3022 = vmatpush3.bf16.msra.mxu0 %v3247_v12  ;;  %v3279_v12 = vld [vmem:[#allocation6 + $0xe0] sm:$0xff]  }
 0xd1f   : > { %3023 = vmatprep.subr.bf16.mxu0 %v3479_v2 }
 0xd22   : > { %3024 = vmatpush3.bf16.msra.mxu0 %v3248_v13  ;;  %v3280_v13 = vld [vmem:[#allocation6 + $0xa0] sm:$0xff]  }
 0xd23   : > { %2874 = vmatprep.subr.bf16.mxu0 %v3273_v5 }
 0xdc5   : > { %v1873_v14 = vpop.f32.mrf.mxu0 }
 0xdc7   : > { %v3007_v15 = vpop.f32.mrf.mxu0 }
 0xdc8   : > { %v3282_v15 = vld [vmem:[#allocation6 + $0x98] sm:$0xff]  }
 0xdc9   : > { %v1876_v16 = vpop.f32.mrf.mxu0 }
 0xdca   : > { %v1897_v17 = vpack.c.bf16 %v1876_v16, %v1873_v14  ;;  %v3281_v14 = vld [vmem:[#allocation6 + $0xd8] sm:$0xff]   ;;  %v3283_v16 = vld [vmem:[#allocation6 + $0xd0] sm:$0xff]  }
 0xdcb   : > { %v3008_v18 = vpop.f32.mrf.mxu0 }
 0xdcc   : > { %3026 = vmatmul.mubr.bf16.vlgmr.msra.gmra.mxu0 %v1897_v17  ;;  %v3284_v17 = vld [vmem:[#allocation6 + $0x90] sm:$0xff]   ;;  %v3285_v18 = vld [vmem:[#allocation6 + $0xc8] sm:$0xff]  }
 0xdcd   : > { %2875 = vmatpush3.bf16.msra.mxu0 %v3274_v41 }
 0xdce   : > { %2876 = vmatprep.subr.bf16.mxu0 %v3275_v6 }
 0xdd1   : > { %2877 = vmatpush3.bf16.msra.mxu0 %v3276_v9 }
 0xdd2   : > { %2878 = vmatprep.subr.bf16.mxu0 %v3277_v10 }
 0xdd5   : > { %2879 = vmatpush3.bf16.msra.mxu0 %v3278_v11 }
 0xdd6   : > { %2880 = vmatprep.subr.bf16.mxu0 %v3279_v12 }
 0xdd9   : > { %2881 = vmatpush3.bf16.msra.mxu0 %v3280_v13 }
 0xdda   : > { %2882 = vmatprep.subr.bf16.mxu0 %v3281_v14  ;;  %v1511_v14 = vld [vmem:[%s3926_s3 + $0x13] ss:$0 sm:$0xff] }
 0xddd   : > { %2883 = vmatpush3.bf16.msra.mxu0 %v3282_v15 }
 0xdde   : > { %2884 = vmatprep.subr.bf16.mxu0 %v3283_v16 }
 0xde1   : > { %2885 = vmatpush3.bf16.msra.mxu0 %v3284_v17  ;;  %v3289_v17 = vld [vmem:[#allocation7 + $0x38] sm:$0xff]  }
 0xde2   : > { %2886 = vmatprep.subr.bf16.mxu0 %v3285_v18  ;;  %v3290_v18 = vld [vmem:[#allocation7 + $0x30] sm:$0xff]  }
 0xe8c   : > { %v1980_v19 = vpop.f32.mrf.mxu0 }
 0xe8d   : > { %v1987_v24 = vadd.f32 %v1980_v19, %v3817_v20  ;;  %v3286_v19 = vld [vmem:[#allocation6 + $0x88] sm:$0xff]  }
 0xe8e   : > { %v3027_v25 = vpop.f32.mrf.mxu0  ;;  %2887 = vmatpush3.bf16.msra.mxu0 %v3286_v19 }
 0xe8f   : > { %1989 = vadd.xlane.f32.xlu0 %v1987_v24  ;;  %v3288_v25 = vld [vmem:[#allocation6 + $0x80] sm:$0xff]  }
 0xe90   : > { %v1983_v26 = vpop.f32.mrf.mxu0 }
 0xe91   : > { %v1988_v27 = vadd.f32 %v1983_v26, %v3819_v23  ;;  %v3257_v23 = vld [vmem:[#allocation4 + $0xd4] ss:$8 sps:$4 sm:$0xff]   ;;  %v2705_v26 = vld [vmem:[%s3926_s3 + $0x12] ss:$8 sm:$0x3] }
 0xe92   : > { %v3028_v30 = vpop.f32.mrf.mxu0  ;;  %2128 = vmatprep.subr.bf16.mxu1 %v3257_v23 }
 0xe93   : > { %1991 = vadd.xlane.f32.xlu1 %v1988_v27  ;;  %2129 = vmatpush1.bf16.msra.mxu1 %v3255_v7  ;;  %v2041_v30 = vrot.slane %v2705_v26, %v1143_v32 }
 0xe94   : > { %2130 = vmatprep.subr.bf16.mxu1 %v3260_v8 }
 0xe97   : > { %2131 = vmatpush1.bf16.msra.mxu1 %v3258_v43 }
 0xe98   : > { %2132 = vmatprep.subr.bf16.mxu1 %v3263_v22 }
 0xe9b   : > { %2133 = vmatpush1.bf16.msra.mxu1 %v3261_v44 }
 0xe9c   : > { %2134 = vmatprep.subr.bf16.mxu1 %v3266_v45 }
 0xe9f   : > { %2135 = vmatpush1.bf16.msra.mxu1 %v3264_v46 }
 0xea0   : > { %2136 = vmatprep.subr.bf16.mxu1 %v3269_v47 }
 0xea3   : > { %2137 = vmatpush1.bf16.msra.mxu1 %v3267_v48 }
 0xea4   : > { %2138 = vmatprep.subr.bf16.mxu1 %v3272_v49 }
 0xea7   : > { %2139 = vmatpush1.bf16.msra.mxu1 %v3270_v50 }
 0xea8   : > { %3029 = vmatprep.subr.bf16.mxu1 %v3479_v2 }
 0xf18   : > { %v1990_v35 = vpop.xlane.xlu0 %1989 }
 0xf19   : > { %v1993_v36 = vmul.f32 0.0078125, %v1990_v35 }
 0xf1b   : > { %v1995_v37 = vsub.f32 %v1987_v24, %v1993_v36  ;;  %v3287_v24 = vld [vmem:[#allocation6 + $0xc0] sm:$0xff]  }
 0xf1c   : > { %v1992_v39 = vpop.xlane.xlu1 %1991  ;;  %2888 = vmatprep.subr.bf16.mxu0 %v3287_v24 }
 0xf1d   : > { %v1994_v31 = vmul.f32 0.0078125, %v1992_v39  ;;  %v1997_v40 = vmul.f32 %v1995_v37, %v1995_v37  ;;  %2889 = vmatpush3.bf16.msra.mxu0 %v3288_v25 }
 0xf1f   : > { %v1996_v1 = vsub.f32 %v1988_v27, %v1994_v31  ;;  %1999 = vadd.xlane.f32.xlu0 %v1997_v40  ;;  %v2037_v27 = vrot.slane %v2705_v26, %v1139_v29 }
 0xf21   : > { %v1998_v20 = vmul.f32 %v1996_v1, %v1996_v1 }
 0xf23   : > { %2001 = vadd.xlane.f32.xlu1 %v1998_v20 }
 0xfa8   : > { %v2000_v51 = vpop.xlane.xlu0 %1999 }
 0xfa9   : > { %v2003_v52 = vmul.f32 0.0078125, %v2000_v51 }
 0xfab   : > { %v2005_v53 = vadd.f32 1e-12, %v2003_v52 }
 0xfac   : > { %v2002_v54 = vpop.xlane.xlu1 %2001 }
 0xfad   : > { %3329 = vrsqrt.f32 %v2005_v53  ;;  %v2004_v55 = vmul.f32 0.0078125, %v2002_v54 }
 0xfaf   : > { %v2006_v56 = vadd.f32 1e-12, %v2004_v55 }
 0xfb1   : > { %3331 = vrsqrt.f32 %v2006_v56 }
 0xfba   : > { %v3330_v57 = vpop.eup %3329 }
 0xfbb   : > { %v2009_v58 = vmul.f32 %v3330_v57, %v1995_v37 }
 0xfbd   : > { %v2011_v62 = vmul.f32 %v2009_v58, %v1507_v59 }
 0xfbe   : > { %v3332_v60 = vpop.eup %3331 }
 0xfbf   : > { %v2010_v61 = vmul.f32 %v3332_v60, %v1996_v1  ;;  %v2013_v3 = vadd.f32 %v2011_v62, %v1508_v63 }
 0xfc1   : > { %v2012_v0 = vmul.f32 %v2010_v61, %v1507_v59 }
 0xfc3   : > { %v3884_v4 = vadd.f32 %v2012_v0, %v1508_v63 }
 0xfc5   : > { %v2032_v38 = vpack.c.bf16 %v3884_v4, %v2013_v3 }
 0xfc7   : > { %2157 = vmatmul.mubr.bf16.vlgmr.msra.gmra.mxu1 %v2032_v38 }
 0xfc8   : > { %3045 = vmatprep.mubr.msk.bf16.mxu1 %vm3484_vm0, %v3479_v2  ;;  %3030 = vmatpush3.bf16.msra.mxu1 %v3289_v17 }
 0xfc9   : > { %3031 = vmatprep.subr.bf16.mxu1 %v3479_v2 }
 0xfcc   : > { %3032 = vmatpush3.bf16.msra.mxu1 %v3290_v18 }
 0xfcd   : > { %3033 = vmatprep.subr.bf16.mxu1 %v3479_v2 }
0x1087   : > { %v2158_v33 = vpop.f32.mrf.mxu1 }
0x1088   : > { %v2159_v34 = vadd.f32 %v2158_v33, %v2037_v27  ;;  %v3294_v33 = vld [vmem:[#allocation7 + $0x10] sm:$0xff]  }
0x1089   : > { %v2160_v35 = vpop.f32.mrf.mxu1 }
0x108a   : > { %v2167_v36 = vmul.f32 %v2159_v34, %v2159_v34  ;;  %v2161_v37 = vadd.f32 %v2160_v35, %v2041_v30  ;;  %v3296_v35 = vld [vmem:[#allocation7] sm:$0xff]  }
0x108b   : > { %v2162_v39 = vpop.f32.mrf.mxu1 }
0x108c   : > { %v2171_v31 = vmul.f32 %v2167_v36, %v2159_v34  ;;  %v2168_v40 = vmul.f32 %v2161_v37, %v2161_v37  ;;  %v2163_v1 = vadd.f32 %v2162_v39, %v2037_v27  ;;  %v3291_v27 = vld [vmem:[#allocation7 + $0x28] sm:$0xff]  }
0x108d   : > { %v2164_v20 = vpop.f32.mrf.mxu1  ;;  %3034 = vmatpush3.bf16.msra.mxu1 %v3291_v27 }
0x108e   : > { %v2175_v21 = vmul.f32 0.044715, %v2171_v31  ;;  %v2172_v42 = vmul.f32 %v2168_v40, %v2161_v37  ;;  %v2169_v23 = vmul.f32 %v2163_v1, %v2163_v1  ;;  %v2165_v7 = vadd.f32 %v2164_v20, %v2041_v30  ;;  %3035 = vmatprep.subr.bf16.mxu1 %v3479_v2  ;;  %v3293_v30 = vld [vmem:[#allocation7 + $0x18] sm:$0xff]   ;;  %v1512_v40 = vld [vmem:[%s3926_s3 + $0x14] ss:$0 sm:$0xff] }
0x108f   : > { %v1513_v20 = vld [vmem:[%s3926_s3 + $0x15] ss:$0 sm:$0xff] }
0x1090   : > { %v2179_v43 = vadd.f32 %v2175_v21, %v2159_v34  ;;  %v2176_v8 = vmul.f32 0.044715, %v2172_v42  ;;  %v2173_v29 = vmul.f32 %v2169_v23, %v2163_v1  ;;  %v2170_v22 = vmul.f32 %v2165_v7, %v2165_v7 }
0x1092   : > { %v2183_v28 = vmul.f32 0.7978846, %v2179_v43  ;;  %v2180_v32 = vadd.f32 %v2176_v8, %v2161_v37  ;;  %v2177_v44 = vmul.f32 0.044715, %v2173_v29  ;;  %v2174_v45 = vmul.f32 %v2170_v22, %v2165_v7 }
0x1094   : > { %v2184_v46 = vmul.f32 0.7978846, %v2180_v32  ;;  %v2181_v47 = vadd.f32 %v2177_v44, %v2163_v1  ;;  %v2178_v48 = vmul.f32 0.044715, %v2174_v45  ;;  %3333 = vtanh.f32 %v2183_v28 }
0x1096   : > { %3335 = vtanh.f32 %v2184_v46  ;;  %v2185_v49 = vmul.f32 0.7978846, %v2181_v47  ;;  %v2182_v50 = vadd.f32 %v2178_v48, %v2165_v7 }
0x1098   : > { %3337 = vtanh.f32 %v2185_v49  ;;  %v2186_v51 = vmul.f32 0.7978846, %v2182_v50 }
0x109a   : > { %3339 = vtanh.f32 %v2186_v51 }
0x10a1   : > { %v3334_v52 = vpop.eup %3333 }
0x10a2   : > { %v2191_v56 = vadd.f32 1.0, %v3334_v52 }
0x10a3   : > { %v3336_v53 = vpop.eup %3335 }
0x10a4   : > { %v2192_v54 = vadd.f32 1.0, %v3336_v53  ;;  %v2195_v62 = vmul.f32 0.5, %v2191_v56 }
0x10a5   : > { %v3338_v55 = vpop.eup %3337 }
0x10a6   : > { %v2193_v57 = vadd.f32 1.0, %v3338_v55  ;;  %v2196_v61 = vmul.f32 0.5, %v2192_v54  ;;  %v2199_v5 = vmul.f32 %v2195_v62, %v2159_v34  ;;  %v3295_v34 = vld [vmem:[#allocation7 + $0x8] sm:$0xff]  }
0x10a7   : > { %v3340_v58 = vpop.eup %3339 }
0x10a8   : > { %v2197_v59 = vmul.f32 0.5, %v2193_v57  ;;  %v2194_v60 = vadd.f32 1.0, %v3340_v58  ;;  %v2200_v3 = vmul.f32 %v2196_v61, %v2161_v37 }
0x10aa   : > { %v2198_v63 = vmul.f32 0.5, %v2194_v60  ;;  %v2201_v0 = vmul.f32 %v2197_v59, %v2163_v1 }
0x10ac   : > { %v2202_v38 = vmul.f32 %v2198_v63, %v2165_v7  ;;  %v2236_v6 = vpack.c.bf16 %v2201_v0, %v2199_v5 }
0x10ae   : > { %v2237_v41 = vpack.c.bf16 %v2202_v38, %v2200_v3 }
0x10b0   : > { %2366 = vmatprep.mubr.bf16.mxu0 %v2237_v41 }
0x10b1   : > { %2367 = vmatmul.mubr.bf16.vlgmr.msra.gmra.mxu0 %v2236_v6 }
0x1171   : > { %v2890_v9 = vpop.f32.mrf.mxu0 }
0x1173   : > { %v2891_v10 = vpop.f32.mrf.mxu0 }
0x1175   : > { %v2893_v11 = vpop.f32.mrf.mxu0 }
0x1177   : > { %v2894_v12 = vpop.f32.mrf.mxu0 }
0x1178   : > { %v2895_v13 = vadd.f32 %v2894_v12, %v2893_v11 }
0x117a   : > { %v2374_v15 = vadd.f32 %v2895_v13, %v3884_v4  ;;  %v3292_v4 = vld [vmem:[#allocation7 + $0x20] sm:$0xff]  }
0x117b   : > { %3036 = vmatpush3.bf16.msra.mxu1 %v3292_v4 }
0x117c   : > { %v2375_v16 = vadd.f32 %v2374_v15, %v1511_v14  ;;  %3037 = vmatprep.subr.bf16.mxu1 %v3479_v2 }
0x117e   : > { %2376 = vadd.xlane.f32.xlu0 %v2375_v16 }
0x117f   : > { %3038 = vmatpush3.bf16.msra.mxu1 %v3293_v30 }
0x1180   : > { %3039 = vmatprep.subr.bf16.mxu1 %v3479_v2 }
0x1183   : > { %3040 = vmatpush3.bf16.msra.mxu1 %v3294_v33 }
0x1184   : > { %3041 = vmatprep.subr.bf16.mxu1 %v3479_v2 }
0x1187   : > { %3042 = vmatpush3.bf16.msra.mxu1 %v3295_v34 }
0x1188   : > { %3043 = vmatprep.subr.bf16.mxu1 %v3479_v2  ;;  %v412_v2 = vld [vmem:[%s3926_s3 + $0x1] ss:$0 sm:$0xff] }
0x118b   : > { %3044 = vmatpush3.bf16.msra.mxu1 %v3296_v35 }
0x1207   : > { %v2377_v19 = vpop.xlane.xlu0 %2376 }
0x1208   : > { %v2378_v24 = vmul.f32 0.0078125, %v2377_v19 }
0x120a   : > { %v2379_v25 = vsub.f32 %v2375_v16, %v2378_v24 }
0x120c   : > { %v2380_v26 = vmul.f32 %v2379_v25, %v2379_v25 }
0x120e   : > { %2381 = vadd.xlane.f32.xlu1 %v2380_v26 }
0x1297   : > { %v2382_v36 = vpop.xlane.xlu1 %2381 }
0x1298   : > { %v2383_v37 = vmul.f32 0.0078125, %v2382_v36 }
0x129a   : > { %v2384_v39 = vadd.f32 1e-12, %v2383_v37 }
0x129c   : > { %3341 = vrsqrt.f32 %v2384_v39 }
0x12a9   : > { %v3342_v31 = vpop.eup %3341 }
0x12aa   : > { %v2386_v1 = vmul.f32 %v3342_v31, %v2379_v25 }
0x12ac   : > { %v2387_v21 = vmul.f32 %v2386_v1, %v1512_v40 }
0x12ae   : > { %v2388_v42 = vadd.f32 %v2387_v21, %v1513_v20 }
0x12b0   : > { %v2405_v23 = vpack.c.bf16 %v2388_v42, %v2388_v42 }
0x12b2   : > { %3046 = vmatmul.mubr.bf16.vlgmr.msra.gmra.mxu1 %v2405_v23 }
0x1372   : > { %v2488_v7 = vpop.f32.mrf.mxu1 }
0x1373   : > { %v2489_v43 = vadd.f32 %v2488_v7, %v412_v2 }
0x1374   : > { %v3047_v8 = vpop.f32.mrf.mxu1 }
0x1375   : > { %2494 = vst [vmem:[%s409_s10] sm:$0xff] %v2489_v43 }
0x1376   : > { %v2491_v29 = vpop.f32.mrf.mxu1 }
0x1378   : > { %v3048_v22 = vpop.f32.mrf.mxu1 }
0x1379 PF: > { %s22_s30 = sadd.s32 1, %s3465_s30  }
0x137a   : > { %p19_p2 = scmp.ge.s32.totalorder %s22_s30, 4  }
0x137c   :  { %21 = sbr.rel (!%p19_p2) target bundleno = 3 (0x3), region = 112 }
0x1381   :  { %2514 = vsyncpa [#allocation3], 1 }
0x1382   :  { %2516 = vsyncpa [#allocation3 + $0x1], 1 }
0x1383   :  { %2517 = vsyncpa [#allocation5], 1 }
0x1384   :  { %2518 = vsyncpa [#allocation8], 1 }

</bundles_post_ra>
